<compile_context>
chip_gen: v6e
topology: v6e:2x2x1
jax: 0.10.0
libtpu: 0.0.40
codegen_flags: <defaults>
</compile_context>

<pallas_src>
import numpy as np
import jax
import jax.numpy as jnp
from jax import lax
from jax.experimental import pallas as pl
from jax.experimental.pallas import tpu as pltpu

SELU_ALPHA = 1.6732632423543772
SELU_SCALE = 1.0507009873554805
EPS = 1e-5  # F.instance_norm default eps


def _selu(x):
    return SELU_SCALE * jnp.where(x > 0, x, SELU_ALPHA * (jnp.exp(x) - 1.0))


# ----------------------------------------------------------------------------
# Pallas kernel
# ----------------------------------------------------------------------------
def _make_kernel(H, W, Cin, Ct, Cout):
    HW = H * W

    def kernel(x_ref, masks_ref, ada_ref, c1_ref, c2_ref, c3_ref, c4_ref,
               wb_ref, o_ref):
        x = x_ref[0]                                   # (Cin, HW)  f32
        masks = masks_ref[...]                         # (9, HW)    f32 (0/1)
        wb = wb_ref[0]                                 # (Ct, 6)    f32

        # residual = SELU(adaDim(x)) : (Cout, Cin) @ (Cin, HW) on the MXU
        residual = _selu(jnp.dot(ada_ref[...], x.astype(jnp.bfloat16),
                                 preferred_element_type=jnp.float32))

        def inorm(v):
            # instance norm: per-channel stats over the spatial (lane) axis, f32
            mean = jnp.mean(v, axis=1, keepdims=True)
            var = jnp.mean((v - mean) * (v - mean), axis=1, keepdims=True)
            return (v - mean) * lax.rsqrt(var + EPS)

        def conv3x3(v, w_ref):
            # v: (Ct, HW) f32.  Build one (9*Ct, HW) im2col tensor from lane
            # rolls + precomputed edge masks and do a single K=9*Ct matmul
            # (instead of 9 tiny K=Ct matmuls + VALU accumulates).
            taps = []
            for ky in range(3):
                for kx in range(3):
                    d = (ky - 1) * W + (kx - 1)
                    if d == 0:
                        taps.append(v)                 # center tap: no mask
                    else:
                        shifted = pltpu.roll(v, shift=(-d) % HW, axis=1)
                        t = ky * 3 + kx
                        taps.append(shifted * masks[t:t + 1, :])
            patches = jnp.concatenate(taps, axis=0).astype(jnp.bfloat16)
            return jnp.dot(w_ref[...], patches,
                           preferred_element_type=jnp.float32)   # (Ct, HW)

        w2, b2 = wb[:, 0:1], wb[:, 1:2]
        w3, b3 = wb[:, 2:3], wb[:, 3:4]
        w4, b4 = wb[:, 4:5], wb[:, 5:6]

        xn = inorm(x)
        # (w1, b1) affine + SELU branch is discarded by the original forward.
        out = jnp.dot(c1_ref[...], xn.astype(jnp.bfloat16),
                      preferred_element_type=jnp.float32)         # (Ct, HW)
        out = _selu(inorm(out) * w2 + b2)
        out = conv3x3(out, c2_ref)
        out = _selu(inorm(out) * w3 + b3)
        out = conv3x3(out, c3_ref)
        out = _selu(inorm(out) * w4 + b4)
        out = jnp.dot(c4_ref[...], out.astype(jnp.bfloat16),
                      preferred_element_type=jnp.float32)         # (Cout, HW)
        o_ref[0] = (out + residual).astype(o_ref.dtype)           # lane-dense

    return kernel


# ----------------------------------------------------------------------------
# Precomputed per-tap edge masks (hoisted out of the kernel entirely)
# ----------------------------------------------------------------------------
def _tap_masks(H, W):
    HW = H * W
    row = np.arange(HW) // W
    col = np.arange(HW) % W
    masks = np.ones((9, HW), np.float32)
    for ky in range(3):
        for kx in range(3):
            m = np.ones(HW, np.float32)
            if ky == 0:
                m *= (row != 0)
            if ky == 2:
                m *= (row != H - 1)
            if kx == 0:
                m *= (col != 0)
            if kx == 2:
                m *= (col != W - 1)
            masks[ky * 3 + kx] = m
    return jnp.asarray(masks)


# ----------------------------------------------------------------------------
# Wrapper (glue: layout transposes, parameter packing, pallas_call)
# ----------------------------------------------------------------------------
def big_residual_block(x_nhwc, params, wvec=None, bvec=None):
    ada_k, c1_k, c2_k, c3_k, c4_k = params      # reference-layout weights
    N, H, W, Cin = x_nhwc.shape
    Ct = c1_k.shape[1]
    Cout = ada_k.shape[1]
    HW = H * W
    P = Cin + 3 * Ct

    if wvec is None:
        # identical semantics to the w=None / b=None path
        wvec = jnp.ones((N, P), jnp.float32)
        bvec = jnp.zeros((N, P), jnp.float32)

    # Consolidated per-sample affine params: (N, Ct, 6) = [w2 b2 w3 b3 w4 b4]
    def sl(v, off):
        return v[:, off:off + Ct].astype(jnp.float32)

    wb = jnp.stack([sl(wvec, Cin), sl(bvec, Cin),
                    sl(wvec, Cin + Ct), sl(bvec, Cin + Ct),
                    sl(wvec, Cin + 2 * Ct), sl(bvec, Cin + 2 * Ct)], axis=-1)

    # Kernel-side weight layouts (out-channels on sublanes), bf16 MXU operands.
    ada_w = jnp.transpose(ada_k, (1, 0)).astype(jnp.bfloat16)            # (Cout, Cin)
    c1_w = jnp.transpose(c1_k, (1, 0)).astype(jnp.bfloat16)              # (Ct, Cin)
    c2_w = jnp.transpose(c2_k, (3, 0, 1, 2)).reshape(Ct, 9 * Ct).astype(jnp.bfloat16)
    c3_w = jnp.transpose(c3_k, (3, 0, 1, 2)).reshape(Ct, 9 * Ct).astype(jnp.bfloat16)
    c4_w = jnp.transpose(c4_k, (1, 0)).astype(jnp.bfloat16)              # (Cout, Ct)

    # (N, Cin, HW): channels on sublanes, flattened spatial on lanes.
    x_cf = jnp.transpose(x_nhwc, (0, 3, 1, 2)).reshape(N, Cin, HW).astype(jnp.float32)
    masks = _tap_masks(H, W)

    def full(shape):
        return pl.BlockSpec(shape, lambda n: (0,) * len(shape))

    def per_n(d1, d2):
        return pl.BlockSpec((1, d1, d2), lambda n: (n, 0, 0))

    # TODO(synk): for large H*W / Cin this whole-image-per-sample tiling should
    # be split along H (with a 1-row halo) and vmem_limit_bytes budgeted for
    # v7x's 64 MiB VMEM; at these sizes everything fits comfortably.
    out = pl.pallas_call(
        _make_kernel(H, W, Cin, Ct, Cout),
        out_shape=jax.ShapeDtypeStruct((N, Cout, HW), jnp.float32),
        grid_spec=pltpu.PrefetchScalarGridSpec(
            num_scalar_prefetch=0,
            grid=(N,),
            in_specs=[
                per_n(Cin, HW),          # x (channels x flattened spatial)
                full((9, HW)),           # precomputed 3x3 tap masks
                full((Cout, Cin)),       # adaDim 1x1
                full((Ct, Cin)),         # conv1 1x1
                full((Ct, 9 * Ct)),      # conv2 im2col weight
                full((Ct, 9 * Ct)),      # conv3 im2col weight
                full((Cout, Ct)),        # conv4 1x1
                per_n(Ct, 6),            # consolidated (w2,b2,w3,b3,w4,b4)
            ],
            out_specs=per_n(Cout, HW),
        ),
        compiler_params=pltpu.CompilerParams(
            dimension_semantics=("parallel",)),
    )(x_cf, masks, ada_w, c1_w, c2_w, c3_w, c4_w, wb)

    return jnp.transpose(out.reshape(N, Cout, H, W), (0, 2, 3, 1))


# ----------------------------------------------------------------------------
# Deterministic parameter init (synthetic; includes spectral normalization)
# ----------------------------------------------------------------------------
def _spectral_normalize(w_oihw, n_iter=50):
    m = w_oihw.reshape(w_oihw.shape[0], -1)
    v = jnp.ones((m.shape[1],), jnp.float32) / jnp.sqrt(m.shape[1])
    for _ in range(n_iter):
        u = m @ v
        u = u / (jnp.linalg.norm(u) + 1e-12)
        v = m.T @ u
        v = v / (jnp.linalg.norm(v) + 1e-12)
    sigma = u @ (m @ v)
    return w_oihw / sigma


def init_params(key, in_channels, out_channels):
    temp = max(1, in_channels // 4)
    ks = jax.random.split(key, 5)

    def conv_w(k, o, i, kh, kw):
        w = jax.random.normal(k, (o, i, kh, kw), jnp.float32) * 0.3
        return _spectral_normalize(w)

    ada = conv_w(ks[0], out_channels, in_channels, 1, 1)
    c1 = conv_w(ks[1], temp, in_channels, 1, 1)
    c2 = conv_w(ks[2], temp, temp, 3, 3)
    c3 = conv_w(ks[3], temp, temp, 3, 3)
    c4 = conv_w(ks[4], out_channels, temp, 1, 1)

    # torch OIHW -> reference layouts: 1x1 -> (Cin, Cout); 3x3 -> HWIO
    ada_k = jnp.transpose(ada[:, :, 0, 0], (1, 0))
    c1_k = jnp.transpose(c1[:, :, 0, 0], (1, 0))
    c2_k = jnp.transpose(c2, (2, 3, 1, 0))
    c3_k = jnp.transpose(c3, (2, 3, 1, 0))
    c4_k = jnp.transpose(c4[:, :, 0, 0], (1, 0))
    return (ada_k, c1_k, c2_k, c3_k, c4_k)


# ----------------------------------------------------------------------------
# Pure-JAX reference (for correctness check) — full f32
# ----------------------------------------------------------------------------
def reference_forward(x_nhwc, params, wvec=None, bvec=None):
    ada_k, c1_k, c2_k, c3_k, c4_k = params
    Cin = x_nhwc.shape[-1]
    Ct = c1_k.shape[1]

    def conv(x, w_hwio, pad):
        return lax.conv_general_dilated(
            x, w_hwio, (1, 1), pad,
            dimension_numbers=('NHWC', 'HWIO', 'NHWC'))

    def inorm(x):
        mean = jnp.mean(x, axis=(1, 2), keepdims=True)
        var = jnp.mean((x - mean) ** 2, axis=(1, 2), keepdims=True)
        return (x - mean) * lax.rsqrt(var + EPS)

    def affine(x, off):
        if wvec is None:
            return x
        w = wvec[:, off:off + Ct][:, None, None, :]
        b = bvec[:, off:off + Ct][:, None, None, :]
        return x * w + b

    residual = _selu(conv(x_nhwc, ada_k[None, None], 'VALID'))
    xn = inorm(x_nhwc)
    out = conv(xn, c1_k[None, None], 'VALID')
    out = _selu(affine(inorm(out), Cin))
    out = conv(out, c2_k, ((1, 1), (1, 1)))
    out = _selu(affine(inorm(out), Cin + Ct))
    out = conv(out, c3_k, ((1, 1), (1, 1)))
    out = _selu(affine(inorm(out), Cin + 2 * Ct))
    out = conv(out, c4_k[None, None], 'VALID')
    return out + residual


if __name__ == "__main__":
    N, H, W = 2, 16, 16
    in_channels, out_channels = 16, 16
    temp = max(1, in_channels // 4)
    P = in_channels + 3 * temp          # = self.params in the module

    key = jax.random.PRNGKey(0)
    kx, kw, kb, kp = jax.random.split(key, 4)
    params = init_params(kp, in_channels, out_channels)
    x = jax.random.normal(kx, (N, H, W, in_channels), jnp.float32)
    wvec = 1.0 + 0.1 * jax.random.normal(kw, (N, P), jnp.float32)
    bvec = 0.1 * jax.random.normal(kb, (N, P), jnp.float32)

    # Tolerance accounts for bf16 MXU operands (stats/SELU stay f32) vs the
    # pure-f32 reference.
    TOL = dict(rtol=2e-2, atol=2e-2)

    # with per-sample (w, b) modulation
    out = jax.block_until_ready(big_residual_block(x, params, wvec, bvec))
    ref = reference_forward(x, params, wvec, bvec)
    assert out.shape == (N, H, W, out_channels)
    np.testing.assert_allclose(np.asarray(out), np.asarray(ref), **TOL)

    # w=None / b=None path
    out2 = jax.block_until_ready(big_residual_block(x, params))
    ref2 = reference_forward(x, params)
    np.testing.assert_allclose(np.asarray(out2), np.asarray(ref2), **TOL)

    print("KERNEL_OK")
</pallas_src>

<mosaic_0001>
module attributes {stable_mosaic.version = 11 : i64} {
  func.func @kernel(%arg0: i32, %arg1: memref<1x16x256xf32, #tpu.memory_space<vmem>>, %arg2: memref<9x256xf32, #tpu.memory_space<vmem>>, %arg3: memref<16x16xbf16, #tpu.memory_space<vmem>>, %arg4: memref<4x16xbf16, #tpu.memory_space<vmem>>, %arg5: memref<4x36xbf16, #tpu.memory_space<vmem>>, %arg6: memref<4x36xbf16, #tpu.memory_space<vmem>>, %arg7: memref<16x4xbf16, #tpu.memory_space<vmem>>, %arg8: memref<1x4x6xf32, #tpu.memory_space<vmem>>, %arg9: memref<1x16x256xf32, #tpu.memory_space<vmem>>) attributes {dimension_semantics = [#tpu.dimension_semantics<parallel>], iteration_bounds = array<i64: 2>, scalar_prefetch = 0 : i64, scratch_operands = 0 : i64, tpu.core_type = #tpu.core_type<tc>, window_params = [{transform_indices = @transform_0, window_bounds = array<i64: 1, 16, 256>}, {pipeline_mode = #tpu.pipeline_mode<synchronous>, transform_indices = @transform_1, window_bounds = array<i64: 9, 256>}, {pipeline_mode = #tpu.pipeline_mode<synchronous>, transform_indices = @transform_2, window_bounds = array<i64: 16, 16>}, {pipeline_mode = #tpu.pipeline_mode<synchronous>, transform_indices = @transform_3, window_bounds = array<i64: 4, 16>}, {pipeline_mode = #tpu.pipeline_mode<synchronous>, transform_indices = @transform_4, window_bounds = array<i64: 4, 36>}, {pipeline_mode = #tpu.pipeline_mode<synchronous>, transform_indices = @transform_5, window_bounds = array<i64: 4, 36>}, {pipeline_mode = #tpu.pipeline_mode<synchronous>, transform_indices = @transform_6, window_bounds = array<i64: 16, 4>}, {transform_indices = @transform_7, window_bounds = array<i64: 1, 4, 6>}, {transform_indices = @transform_8, window_bounds = array<i64: 1, 16, 256>}]} {
    %c0 = arith.constant 0 : index
    %c0_0 = arith.constant 0 : index
    %c0_1 = arith.constant 0 : index
    %0 = vector.load %arg1[%c0, %c0_0, %c0_1] : memref<1x16x256xf32, #tpu.memory_space<vmem>>, vector<1x16x256xf32>
    %1 = vector.shape_cast %0 : vector<1x16x256xf32> to vector<16x256xf32>
    %c0_2 = arith.constant 0 : index
    %c0_3 = arith.constant 0 : index
    %2 = vector.load %arg2[%c0_2, %c0_3] : memref<9x256xf32, #tpu.memory_space<vmem>>, vector<9x256xf32>
    %c0_4 = arith.constant 0 : index
    %c0_5 = arith.constant 0 : index
    %c0_6 = arith.constant 0 : index
    %3 = vector.load %arg8[%c0_4, %c0_5, %c0_6] : memref<1x4x6xf32, #tpu.memory_space<vmem>>, vector<1x4x6xf32>
    %4 = vector.shape_cast %3 : vector<1x4x6xf32> to vector<4x6xf32>
    %c0_7 = arith.constant 0 : index
    %c0_8 = arith.constant 0 : index
    %5 = vector.load %arg3[%c0_7, %c0_8] : memref<16x16xbf16, #tpu.memory_space<vmem>>, vector<16x16xbf16>
    %6 = arith.truncf %1 : vector<16x256xf32> to vector<16x256xbf16>
    %cst = arith.constant dense<0.000000e+00> : vector<16x256xf32>
    %7 = tpu.matmul %5, %6, %cst {dimension_numbers = #tpu.dot_dimension_numbers<[1], [0], [0], [1], [0, 0, 1, 1], [], []>} : vector<16x16xbf16>, vector<16x256xbf16>, vector<16x256xf32> -> vector<16x256xf32>
    %cst_9 = arith.constant 0.000000e+00 : f32
    %8 = vector.broadcast %cst_9 : f32 to vector<16x256xf32>
    %9 = arith.cmpf ogt, %7, %8 : vector<16x256xf32>
    %10 = math.exp %7 : vector<16x256xf32>
    %cst_10 = arith.constant 1.000000e+00 : f32
    %11 = vector.broadcast %cst_10 : f32 to vector<16x256xf32>
    %12 = arith.subf %10, %11 : vector<16x256xf32>
    %cst_11 = arith.constant 1.67326319 : f32
    %13 = vector.broadcast %cst_11 : f32 to vector<16x256xf32>
    %14 = arith.mulf %13, %12 : vector<16x256xf32>
    %15 = arith.select %9, %7, %14 : vector<16x256xi1>, vector<16x256xf32>
    %cst_12 = arith.constant 1.05070102 : f32
    %16 = vector.broadcast %cst_12 : f32 to vector<16x256xf32>
    %17 = arith.mulf %16, %15 : vector<16x256xf32>
    %18 = vector.extract_strided_slice %4 {offsets = [0, 0], sizes = [4, 1], strides = [1, 1]} : vector<4x6xf32> to vector<4x1xf32>
    %19 = vector.extract_strided_slice %4 {offsets = [0, 1], sizes = [4, 1], strides = [1, 1]} : vector<4x6xf32> to vector<4x1xf32>
    %20 = vector.extract_strided_slice %4 {offsets = [0, 2], sizes = [4, 1], strides = [1, 1]} : vector<4x6xf32> to vector<4x1xf32>
    %21 = vector.extract_strided_slice %4 {offsets = [0, 3], sizes = [4, 1], strides = [1, 1]} : vector<4x6xf32> to vector<4x1xf32>
    %22 = vector.extract_strided_slice %4 {offsets = [0, 4], sizes = [4, 1], strides = [1, 1]} : vector<4x6xf32> to vector<4x1xf32>
    %23 = vector.extract_strided_slice %4 {offsets = [0, 5], sizes = [4, 1], strides = [1, 1]} : vector<4x6xf32> to vector<4x1xf32>
    %cst_13 = arith.constant dense<0.000000e+00> : vector<16xf32>
    %24 = vector.multi_reduction <add>, %1, %cst_13 [1] : vector<16x256xf32> to vector<16xf32>
    %25 = vector.shape_cast %24 : vector<16xf32> to vector<16x1xf32>
    %cst_14 = arith.constant 2.560000e+02 : f32
    %26 = vector.broadcast %cst_14 : f32 to vector<16x1xf32>
    %27 = arith.divf %25, %26 : vector<16x1xf32>
    %28 = vector.broadcast %27 : vector<16x1xf32> to vector<16x256xf32>
    %29 = arith.subf %1, %28 : vector<16x256xf32>
    %30 = vector.broadcast %27 : vector<16x1xf32> to vector<16x256xf32>
    %31 = arith.subf %1, %30 : vector<16x256xf32>
    %32 = arith.mulf %29, %31 : vector<16x256xf32>
    %cst_15 = arith.constant dense<0.000000e+00> : vector<16xf32>
    %33 = vector.multi_reduction <add>, %32, %cst_15 [1] : vector<16x256xf32> to vector<16xf32>
    %34 = vector.shape_cast %33 : vector<16xf32> to vector<16x1xf32>
    %cst_16 = arith.constant 2.560000e+02 : f32
    %35 = vector.broadcast %cst_16 : f32 to vector<16x1xf32>
    %36 = arith.divf %34, %35 : vector<16x1xf32>
    %37 = vector.broadcast %27 : vector<16x1xf32> to vector<16x256xf32>
    %38 = arith.subf %1, %37 : vector<16x256xf32>
    %cst_17 = arith.constant 9.99999974E-6 : f32
    %39 = vector.broadcast %cst_17 : f32 to vector<16x1xf32>
    %40 = arith.addf %36, %39 : vector<16x1xf32>
    %41 = math.rsqrt %40 : vector<16x1xf32>
    %42 = vector.broadcast %41 : vector<16x1xf32> to vector<16x256xf32>
    %43 = arith.mulf %38, %42 : vector<16x256xf32>
    %c0_18 = arith.constant 0 : index
    %c0_19 = arith.constant 0 : index
    %44 = vector.load %arg4[%c0_18, %c0_19] : memref<4x16xbf16, #tpu.memory_space<vmem>>, vector<4x16xbf16>
    %45 = arith.truncf %43 : vector<16x256xf32> to vector<16x256xbf16>
    %cst_20 = arith.constant dense<0.000000e+00> : vector<4x256xf32>
    %46 = tpu.matmul %44, %45, %cst_20 {dimension_numbers = #tpu.dot_dimension_numbers<[1], [0], [0], [1], [0, 0, 1, 1], [], []>} : vector<4x16xbf16>, vector<16x256xbf16>, vector<4x256xf32> -> vector<4x256xf32>
    %cst_21 = arith.constant dense<0.000000e+00> : vector<4xf32>
    %47 = vector.multi_reduction <add>, %46, %cst_21 [1] : vector<4x256xf32> to vector<4xf32>
    %48 = vector.shape_cast %47 : vector<4xf32> to vector<4x1xf32>
    %cst_22 = arith.constant 2.560000e+02 : f32
    %49 = vector.broadcast %cst_22 : f32 to vector<4x1xf32>
    %50 = arith.divf %48, %49 : vector<4x1xf32>
    %51 = vector.broadcast %50 : vector<4x1xf32> to vector<4x256xf32>
    %52 = arith.subf %46, %51 : vector<4x256xf32>
    %53 = vector.broadcast %50 : vector<4x1xf32> to vector<4x256xf32>
    %54 = arith.subf %46, %53 : vector<4x256xf32>
    %55 = arith.mulf %52, %54 : vector<4x256xf32>
    %cst_23 = arith.constant dense<0.000000e+00> : vector<4xf32>
    %56 = vector.multi_reduction <add>, %55, %cst_23 [1] : vector<4x256xf32> to vector<4xf32>
    %57 = vector.shape_cast %56 : vector<4xf32> to vector<4x1xf32>
    %cst_24 = arith.constant 2.560000e+02 : f32
    %58 = vector.broadcast %cst_24 : f32 to vector<4x1xf32>
    %59 = arith.divf %57, %58 : vector<4x1xf32>
    %60 = vector.broadcast %50 : vector<4x1xf32> to vector<4x256xf32>
    %61 = arith.subf %46, %60 : vector<4x256xf32>
    %cst_25 = arith.constant 9.99999974E-6 : f32
    %62 = vector.broadcast %cst_25 : f32 to vector<4x1xf32>
    %63 = arith.addf %59, %62 : vector<4x1xf32>
    %64 = math.rsqrt %63 : vector<4x1xf32>
    %65 = vector.broadcast %64 : vector<4x1xf32> to vector<4x256xf32>
    %66 = arith.mulf %61, %65 : vector<4x256xf32>
    %67 = vector.broadcast %18 : vector<4x1xf32> to vector<4x256xf32>
    %68 = arith.mulf %66, %67 : vector<4x256xf32>
    %69 = vector.broadcast %19 : vector<4x1xf32> to vector<4x256xf32>
    %70 = arith.addf %68, %69 : vector<4x256xf32>
    %cst_26 = arith.constant 0.000000e+00 : f32
    %71 = vector.broadcast %cst_26 : f32 to vector<4x256xf32>
    %72 = arith.cmpf ogt, %70, %71 : vector<4x256xf32>
    %73 = math.exp %70 : vector<4x256xf32>
    %cst_27 = arith.constant 1.000000e+00 : f32
    %74 = vector.broadcast %cst_27 : f32 to vector<4x256xf32>
    %75 = arith.subf %73, %74 : vector<4x256xf32>
    %cst_28 = arith.constant 1.67326319 : f32
    %76 = vector.broadcast %cst_28 : f32 to vector<4x256xf32>
    %77 = arith.mulf %76, %75 : vector<4x256xf32>
    %78 = arith.select %72, %70, %77 : vector<4x256xi1>, vector<4x256xf32>
    %cst_29 = arith.constant 1.05070102 : f32
    %79 = vector.broadcast %cst_29 : f32 to vector<4x256xf32>
    %80 = arith.mulf %79, %78 : vector<4x256xf32>
    %c17_i32 = arith.constant 17 : i32
    %81 = tpu.dynamic_rotate %80 by %c17_i32 dim 1 : vector<4x256xf32>, i32 -> vector<4x256xf32>
    %82 = vector.extract_strided_slice %2 {offsets = [0, 0], sizes = [1, 256], strides = [1, 1]} : vector<9x256xf32> to vector<1x256xf32>
    %83 = vector.broadcast %82 : vector<1x256xf32> to vector<4x256xf32>
    %84 = arith.mulf %81, %83 : vector<4x256xf32>
    %c16_i32 = arith.constant 16 : i32
    %85 = tpu.dynamic_rotate %80 by %c16_i32 dim 1 : vector<4x256xf32>, i32 -> vector<4x256xf32>
    %86 = vector.extract_strided_slice %2 {offsets = [1, 0], sizes = [1, 256], strides = [1, 1]} : vector<9x256xf32> to vector<1x256xf32>
    %87 = vector.broadcast %86 : vector<1x256xf32> to vector<4x256xf32>
    %88 = arith.mulf %85, %87 : vector<4x256xf32>
    %c15_i32 = arith.constant 15 : i32
    %89 = tpu.dynamic_rotate %80 by %c15_i32 dim 1 : vector<4x256xf32>, i32 -> vector<4x256xf32>
    %90 = vector.extract_strided_slice %2 {offsets = [2, 0], sizes = [1, 256], strides = [1, 1]} : vector<9x256xf32> to vector<1x256xf32>
    %91 = vector.broadcast %90 : vector<1x256xf32> to vector<4x256xf32>
    %92 = arith.mulf %89, %91 : vector<4x256xf32>
    %c1_i32 = arith.constant 1 : i32
    %93 = tpu.dynamic_rotate %80 by %c1_i32 dim 1 : vector<4x256xf32>, i32 -> vector<4x256xf32>
    %94 = vector.extract_strided_slice %2 {offsets = [3, 0], sizes = [1, 256], strides = [1, 1]} : vector<9x256xf32> to vector<1x256xf32>
    %95 = vector.broadcast %94 : vector<1x256xf32> to vector<4x256xf32>
    %96 = arith.mulf %93, %95 : vector<4x256xf32>
    %c255_i32 = arith.constant 255 : i32
    %97 = tpu.dynamic_rotate %80 by %c255_i32 dim 1 : vector<4x256xf32>, i32 -> vector<4x256xf32>
    %98 = vector.extract_strided_slice %2 {offsets = [5, 0], sizes = [1, 256], strides = [1, 1]} : vector<9x256xf32> to vector<1x256xf32>
    %99 = vector.broadcast %98 : vector<1x256xf32> to vector<4x256xf32>
    %100 = arith.mulf %97, %99 : vector<4x256xf32>
    %c241_i32 = arith.constant 241 : i32
    %101 = tpu.dynamic_rotate %80 by %c241_i32 dim 1 : vector<4x256xf32>, i32 -> vector<4x256xf32>
    %102 = vector.extract_strided_slice %2 {offsets = [6, 0], sizes = [1, 256], strides = [1, 1]} : vector<9x256xf32> to vector<1x256xf32>
    %103 = vector.broadcast %102 : vector<1x256xf32> to vector<4x256xf32>
    %104 = arith.mulf %101, %103 : vector<4x256xf32>
    %c240_i32 = arith.constant 240 : i32
    %105 = tpu.dynamic_rotate %80 by %c240_i32 dim 1 : vector<4x256xf32>, i32 -> vector<4x256xf32>
    %106 = vector.extract_strided_slice %2 {offsets = [7, 0], sizes = [1, 256], strides = [1, 1]} : vector<9x256xf32> to vector<1x256xf32>
    %107 = vector.broadcast %106 : vector<1x256xf32> to vector<4x256xf32>
    %108 = arith.mulf %105, %107 : vector<4x256xf32>
    %c239_i32 = arith.constant 239 : i32
    %109 = tpu.dynamic_rotate %80 by %c239_i32 dim 1 : vector<4x256xf32>, i32 -> vector<4x256xf32>
    %110 = vector.extract_strided_slice %2 {offsets = [8, 0], sizes = [1, 256], strides = [1, 1]} : vector<9x256xf32> to vector<1x256xf32>
    %111 = vector.broadcast %110 : vector<1x256xf32> to vector<4x256xf32>
    %112 = arith.mulf %109, %111 : vector<4x256xf32>
    %113 = tpu.concatenate %84, %88, %92, %96, %80, %100, %104, %108, %112 in 0 : vector<4x256xf32>, vector<4x256xf32>, vector<4x256xf32>, vector<4x256xf32>, vector<4x256xf32>, vector<4x256xf32>, vector<4x256xf32>, vector<4x256xf32>, vector<4x256xf32> -> vector<36x256xf32>
    %114 = arith.truncf %113 : vector<36x256xf32> to vector<36x256xbf16>
    %c0_30 = arith.constant 0 : index
    %c0_31 = arith.constant 0 : index
    %115 = vector.load %arg5[%c0_30, %c0_31] : memref<4x36xbf16, #tpu.memory_space<vmem>>, vector<4x36xbf16>
    %cst_32 = arith.constant dense<0.000000e+00> : vector<4x256xf32>
    %116 = tpu.matmul %115, %114, %cst_32 {dimension_numbers = #tpu.dot_dimension_numbers<[1], [0], [0], [1], [0, 0, 1, 1], [], []>} : vector<4x36xbf16>, vector<36x256xbf16>, vector<4x256xf32> -> vector<4x256xf32>
    %cst_33 = arith.constant dense<0.000000e+00> : vector<4xf32>
    %117 = vector.multi_reduction <add>, %116, %cst_33 [1] : vector<4x256xf32> to vector<4xf32>
    %118 = vector.shape_cast %117 : vector<4xf32> to vector<4x1xf32>
    %cst_34 = arith.constant 2.560000e+02 : f32
    %119 = vector.broadcast %cst_34 : f32 to vector<4x1xf32>
    %120 = arith.divf %118, %119 : vector<4x1xf32>
    %121 = vector.broadcast %120 : vector<4x1xf32> to vector<4x256xf32>
    %122 = arith.subf %116, %121 : vector<4x256xf32>
    %123 = vector.broadcast %120 : vector<4x1xf32> to vector<4x256xf32>
    %124 = arith.subf %116, %123 : vector<4x256xf32>
    %125 = arith.mulf %122, %124 : vector<4x256xf32>
    %cst_35 = arith.constant dense<0.000000e+00> : vector<4xf32>
    %126 = vector.multi_reduction <add>, %125, %cst_35 [1] : vector<4x256xf32> to vector<4xf32>
    %127 = vector.shape_cast %126 : vector<4xf32> to vector<4x1xf32>
    %cst_36 = arith.constant 2.560000e+02 : f32
    %128 = vector.broadcast %cst_36 : f32 to vector<4x1xf32>
    %129 = arith.divf %127, %128 : vector<4x1xf32>
    %130 = vector.broadcast %120 : vector<4x1xf32> to vector<4x256xf32>
    %131 = arith.subf %116, %130 : vector<4x256xf32>
    %cst_37 = arith.constant 9.99999974E-6 : f32
    %132 = vector.broadcast %cst_37 : f32 to vector<4x1xf32>
    %133 = arith.addf %129, %132 : vector<4x1xf32>
    %134 = math.rsqrt %133 : vector<4x1xf32>
    %135 = vector.broadcast %134 : vector<4x1xf32> to vector<4x256xf32>
    %136 = arith.mulf %131, %135 : vector<4x256xf32>
    %137 = vector.broadcast %20 : vector<4x1xf32> to vector<4x256xf32>
    %138 = arith.mulf %136, %137 : vector<4x256xf32>
    %139 = vector.broadcast %21 : vector<4x1xf32> to vector<4x256xf32>
    %140 = arith.addf %138, %139 : vector<4x256xf32>
    %cst_38 = arith.constant 0.000000e+00 : f32
    %141 = vector.broadcast %cst_38 : f32 to vector<4x256xf32>
    %142 = arith.cmpf ogt, %140, %141 : vector<4x256xf32>
    %143 = math.exp %140 : vector<4x256xf32>
    %cst_39 = arith.constant 1.000000e+00 : f32
    %144 = vector.broadcast %cst_39 : f32 to vector<4x256xf32>
    %145 = arith.subf %143, %144 : vector<4x256xf32>
    %cst_40 = arith.constant 1.67326319 : f32
    %146 = vector.broadcast %cst_40 : f32 to vector<4x256xf32>
    %147 = arith.mulf %146, %145 : vector<4x256xf32>
    %148 = arith.select %142, %140, %147 : vector<4x256xi1>, vector<4x256xf32>
    %cst_41 = arith.constant 1.05070102 : f32
    %149 = vector.broadcast %cst_41 : f32 to vector<4x256xf32>
    %150 = arith.mulf %149, %148 : vector<4x256xf32>
    %c17_i32_42 = arith.constant 17 : i32
    %151 = tpu.dynamic_rotate %150 by %c17_i32_42 dim 1 : vector<4x256xf32>, i32 -> vector<4x256xf32>
    %152 = vector.extract_strided_slice %2 {offsets = [0, 0], sizes = [1, 256], strides = [1, 1]} : vector<9x256xf32> to vector<1x256xf32>
    %153 = vector.broadcast %152 : vector<1x256xf32> to vector<4x256xf32>
    %154 = arith.mulf %151, %153 : vector<4x256xf32>
    %c16_i32_43 = arith.constant 16 : i32
    %155 = tpu.dynamic_rotate %150 by %c16_i32_43 dim 1 : vector<4x256xf32>, i32 -> vector<4x256xf32>
    %156 = vector.extract_strided_slice %2 {offsets = [1, 0], sizes = [1, 256], strides = [1, 1]} : vector<9x256xf32> to vector<1x256xf32>
    %157 = vector.broadcast %156 : vector<1x256xf32> to vector<4x256xf32>
    %158 = arith.mulf %155, %157 : vector<4x256xf32>
    %c15_i32_44 = arith.constant 15 : i32
    %159 = tpu.dynamic_rotate %150 by %c15_i32_44 dim 1 : vector<4x256xf32>, i32 -> vector<4x256xf32>
    %160 = vector.extract_strided_slice %2 {offsets = [2, 0], sizes = [1, 256], strides = [1, 1]} : vector<9x256xf32> to vector<1x256xf32>
    %161 = vector.broadcast %160 : vector<1x256xf32> to vector<4x256xf32>
    %162 = arith.mulf %159, %161 : vector<4x256xf32>
    %c1_i32_45 = arith.constant 1 : i32
    %163 = tpu.dynamic_rotate %150 by %c1_i32_45 dim 1 : vector<4x256xf32>, i32 -> vector<4x256xf32>
    %164 = vector.extract_strided_slice %2 {offsets = [3, 0], sizes = [1, 256], strides = [1, 1]} : vector<9x256xf32> to vector<1x256xf32>
    %165 = vector.broadcast %164 : vector<1x256xf32> to vector<4x256xf32>
    %166 = arith.mulf %163, %165 : vector<4x256xf32>
    %c255_i32_46 = arith.constant 255 : i32
    %167 = tpu.dynamic_rotate %150 by %c255_i32_46 dim 1 : vector<4x256xf32>, i32 -> vector<4x256xf32>
    %168 = vector.extract_strided_slice %2 {offsets = [5, 0], sizes = [1, 256], strides = [1, 1]} : vector<9x256xf32> to vector<1x256xf32>
    %169 = vector.broadcast %168 : vector<1x256xf32> to vector<4x256xf32>
    %170 = arith.mulf %167, %169 : vector<4x256xf32>
    %c241_i32_47 = arith.constant 241 : i32
    %171 = tpu.dynamic_rotate %150 by %c241_i32_47 dim 1 : vector<4x256xf32>, i32 -> vector<4x256xf32>
    %172 = vector.extract_strided_slice %2 {offsets = [6, 0], sizes = [1, 256], strides = [1, 1]} : vector<9x256xf32> to vector<1x256xf32>
    %173 = vector.broadcast %172 : vector<1x256xf32> to vector<4x256xf32>
    %174 = arith.mulf %171, %173 : vector<4x256xf32>
    %c240_i32_48 = arith.constant 240 : i32
    %175 = tpu.dynamic_rotate %150 by %c240_i32_48 dim 1 : vector<4x256xf32>, i32 -> vector<4x256xf32>
    %176 = vector.extract_strided_slice %2 {offsets = [7, 0], sizes = [1, 256], strides = [1, 1]} : vector<9x256xf32> to vector<1x256xf32>
    %177 = vector.broadcast %176 : vector<1x256xf32> to vector<4x256xf32>
    %178 = arith.mulf %175, %177 : vector<4x256xf32>
    %c239_i32_49 = arith.constant 239 : i32
    %179 = tpu.dynamic_rotate %150 by %c239_i32_49 dim 1 : vector<4x256xf32>, i32 -> vector<4x256xf32>
    %180 = vector.extract_strided_slice %2 {offsets = [8, 0], sizes = [1, 256], strides = [1, 1]} : vector<9x256xf32> to vector<1x256xf32>
    %181 = vector.broadcast %180 : vector<1x256xf32> to vector<4x256xf32>
    %182 = arith.mulf %179, %181 : vector<4x256xf32>
    %183 = tpu.concatenate %154, %158, %162, %166, %150, %170, %174, %178, %182 in 0 : vector<4x256xf32>, vector<4x256xf32>, vector<4x256xf32>, vector<4x256xf32>, vector<4x256xf32>, vector<4x256xf32>, vector<4x256xf32>, vector<4x256xf32>, vector<4x256xf32> -> vector<36x256xf32>
    %184 = arith.truncf %183 : vector<36x256xf32> to vector<36x256xbf16>
    %c0_50 = arith.constant 0 : index
    %c0_51 = arith.constant 0 : index
    %185 = vector.load %arg6[%c0_50, %c0_51] : memref<4x36xbf16, #tpu.memory_space<vmem>>, vector<4x36xbf16>
    %cst_52 = arith.constant dense<0.000000e+00> : vector<4x256xf32>
    %186 = tpu.matmul %185, %184, %cst_52 {dimension_numbers = #tpu.dot_dimension_numbers<[1], [0], [0], [1], [0, 0, 1, 1], [], []>} : vector<4x36xbf16>, vector<36x256xbf16>, vector<4x256xf32> -> vector<4x256xf32>
    %cst_53 = arith.constant dense<0.000000e+00> : vector<4xf32>
    %187 = vector.multi_reduction <add>, %186, %cst_53 [1] : vector<4x256xf32> to vector<4xf32>
    %188 = vector.shape_cast %187 : vector<4xf32> to vector<4x1xf32>
    %cst_54 = arith.constant 2.560000e+02 : f32
    %189 = vector.broadcast %cst_54 : f32 to vector<4x1xf32>
    %190 = arith.divf %188, %189 : vector<4x1xf32>
    %191 = vector.broadcast %190 : vector<4x1xf32> to vector<4x256xf32>
    %192 = arith.subf %186, %191 : vector<4x256xf32>
    %193 = vector.broadcast %190 : vector<4x1xf32> to vector<4x256xf32>
    %194 = arith.subf %186, %193 : vector<4x256xf32>
    %195 = arith.mulf %192, %194 : vector<4x256xf32>
    %cst_55 = arith.constant dense<0.000000e+00> : vector<4xf32>
    %196 = vector.multi_reduction <add>, %195, %cst_55 [1] : vector<4x256xf32> to vector<4xf32>
    %197 = vector.shape_cast %196 : vector<4xf32> to vector<4x1xf32>
    %cst_56 = arith.constant 2.560000e+02 : f32
    %198 = vector.broadcast %cst_56 : f32 to vector<4x1xf32>
    %199 = arith.divf %197, %198 : vector<4x1xf32>
    %200 = vector.broadcast %190 : vector<4x1xf32> to vector<4x256xf32>
    %201 = arith.subf %186, %200 : vector<4x256xf32>
    %cst_57 = arith.constant 9.99999974E-6 : f32
    %202 = vector.broadcast %cst_57 : f32 to vector<4x1xf32>
    %203 = arith.addf %199, %202 : vector<4x1xf32>
    %204 = math.rsqrt %203 : vector<4x1xf32>
    %205 = vector.broadcast %204 : vector<4x1xf32> to vector<4x256xf32>
    %206 = arith.mulf %201, %205 : vector<4x256xf32>
    %207 = vector.broadcast %22 : vector<4x1xf32> to vector<4x256xf32>
    %208 = arith.mulf %206, %207 : vector<4x256xf32>
    %209 = vector.broadcast %23 : vector<4x1xf32> to vector<4x256xf32>
    %210 = arith.addf %208, %209 : vector<4x256xf32>
    %cst_58 = arith.constant 0.000000e+00 : f32
    %211 = vector.broadcast %cst_58 : f32 to vector<4x256xf32>
    %212 = arith.cmpf ogt, %210, %211 : vector<4x256xf32>
    %213 = math.exp %210 : vector<4x256xf32>
    %cst_59 = arith.constant 1.000000e+00 : f32
    %214 = vector.broadcast %cst_59 : f32 to vector<4x256xf32>
    %215 = arith.subf %213, %214 : vector<4x256xf32>
    %cst_60 = arith.constant 1.67326319 : f32
    %216 = vector.broadcast %cst_60 : f32 to vector<4x256xf32>
    %217 = arith.mulf %216, %215 : vector<4x256xf32>
    %218 = arith.select %212, %210, %217 : vector<4x256xi1>, vector<4x256xf32>
    %cst_61 = arith.constant 1.05070102 : f32
    %219 = vector.broadcast %cst_61 : f32 to vector<4x256xf32>
    %220 = arith.mulf %219, %218 : vector<4x256xf32>
    %c0_62 = arith.constant 0 : index
    %c0_63 = arith.constant 0 : index
    %221 = vector.load %arg7[%c0_62, %c0_63] : memref<16x4xbf16, #tpu.memory_space<vmem>>, vector<16x4xbf16>
    %222 = arith.truncf %220 : vector<4x256xf32> to vector<4x256xbf16>
    %cst_64 = arith.constant dense<0.000000e+00> : vector<16x256xf32>
    %223 = tpu.matmul %221, %222, %cst_64 {dimension_numbers = #tpu.dot_dimension_numbers<[1], [0], [0], [1], [0, 0, 1, 1], [], []>} : vector<16x4xbf16>, vector<4x256xbf16>, vector<16x256xf32> -> vector<16x256xf32>
    %224 = arith.addf %223, %17 : vector<16x256xf32>
    %c0_65 = arith.constant 0 : index
    %c0_66 = arith.constant 0 : index
    %c0_67 = arith.constant 0 : index
    %225 = vector.load %arg9[%c0_65, %c0_66, %c0_67] : memref<1x16x256xf32, #tpu.memory_space<vmem>>, vector<1x16x256xf32>
    %226 = vector.shape_cast %225 : vector<1x16x256xf32> to vector<16x256xf32>
    %227 = vector.shape_cast %224 : vector<16x256xf32> to vector<1x16x256xf32>
    tpu.vector_store %arg9[%c0_65, %c0_66, %c0_67], %227 {strides = array<i32>} : memref<1x16x256xf32, #tpu.memory_space<vmem>>, vector<1x16x256xf32>,
    return
  }
  func.func @transform_0(%arg0: i32) -> (i32, i32, i32) {
    %c0_i32 = arith.constant 0 : i32
    %c0_i32_0 = arith.constant 0 : i32
    %c0_i32_1 = arith.constant 0 : i32
    return %arg0, %c0_i32, %c0_i32_0 : i32, i32, i32
  }
  func.func @transform_1(%arg0: i32) -> (i32, i32) {
    %c0_i32 = arith.constant 0 : i32
    %c0_i32_0 = arith.constant 0 : i32
    %c0_i32_1 = arith.constant 0 : i32
    return %c0_i32, %c0_i32_0 : i32, i32
  }
  func.func @transform_2(%arg0: i32) -> (i32, i32) {
    %c0_i32 = arith.constant 0 : i32
    %c0_i32_0 = arith.constant 0 : i32
    %c0_i32_1 = arith.constant 0 : i32
    return %c0_i32, %c0_i32_0 : i32, i32
  }
  func.func @transform_3(%arg0: i32) -> (i32, i32) {
    %c0_i32 = arith.constant 0 : i32
    %c0_i32_0 = arith.constant 0 : i32
    %c0_i32_1 = arith.constant 0 : i32
    return %c0_i32, %c0_i32_0 : i32, i32
  }
  func.func @transform_4(%arg0: i32) -> (i32, i32) {
    %c0_i32 = arith.constant 0 : i32
    %c0_i32_0 = arith.constant 0 : i32
    %c0_i32_1 = arith.constant 0 : i32
    return %c0_i32, %c0_i32_0 : i32, i32
  }
  func.func @transform_5(%arg0: i32) -> (i32, i32) {
    %c0_i32 = arith.constant 0 : i32
    %c0_i32_0 = arith.constant 0 : i32
    %c0_i32_1 = arith.constant 0 : i32
    return %c0_i32, %c0_i32_0 : i32, i32
  }
  func.func @transform_6(%arg0: i32) -> (i32, i32) {
    %c0_i32 = arith.constant 0 : i32
    %c0_i32_0 = arith.constant 0 : i32
    %c0_i32_1 = arith.constant 0 : i32
    return %c0_i32, %c0_i32_0 : i32, i32
  }
  func.func @transform_7(%arg0: i32) -> (i32, i32, i32) {
    %c0_i32 = arith.constant 0 : i32
    %c0_i32_0 = arith.constant 0 : i32
    %c0_i32_1 = arith.constant 0 : i32
    return %arg0, %c0_i32, %c0_i32_0 : i32, i32, i32
  }
  func.func @transform_8(%arg0: i32) -> (i32, i32, i32) {
    %c0_i32 = arith.constant 0 : i32
    %c0_i32_0 = arith.constant 0 : i32
    %c0_i32_1 = arith.constant 0 : i32
    return %arg0, %c0_i32, %c0_i32_0 : i32, i32, i32
  }
}

</mosaic_0001>

<bundles_post_ra>
// kernel: tpu_custom_call.1
= control target key start
LH: loop header
LB: loop body
LE: loop exit
PB: predicated region body
PF: predicated region fallthrough
CT: control target
= control target key end

     0   :  { %s2297_s0 = inlined_call_operand.hbm [shape: f32[2,16,256], index: 0, kind: input, shape index: {}]   ;;  %s2298_s1 = inlined_call_operand.hbm [shape: f32[9,256], index: 1, kind: input, shape index: {}]   ;;  %s2299_s2 = inlined_call_operand.vmem [shape: bf16[16,16], index: 2, kind: input, shape index: {}]   ;;  %s2300_s3 = inlined_call_operand.hbm [shape: bf16[4,16], index: 3, kind: input, shape index: {}]   ;;  %s2301_s4 = inlined_call_operand.hbm [shape: bf16[4,36], index: 4, kind: input, shape index: {}]   ;;  %s2302_s5 = inlined_call_operand.hbm [shape: bf16[4,36], index: 5, kind: input, shape index: {}]   ;;  %s2303_s6 = inlined_call_operand.vmem [shape: bf16[16,4], index: 6, kind: input, shape index: {}]   ;;  %s2304_s7 = inlined_call_operand.vmem [shape: f32[2,4,6], index: 7, kind: input, shape index: {}]   ;;  %s2305_s8 = inlined_call_operand.hbm [shape: f32[2,16,256], index: 8, kind: output, shape index: {}]  }
   0x1   :  { %2312 = sst [smem:[#allocation16_spill]] %s2298_s1 }
   0x2   :  { %2313 = sst [smem:[#allocation17_spill]] %s2300_s3 }
   0x3   :  { %13 = vsyncpa [#allocation3], 0 }
   0x4   :  { %15 = vsyncpa [#allocation3 + $0x1], 0 }
   0x5   :  { %16 = vsyncpa [#allocation6], 0 }
   0x6   :  { %17 = vsyncpa [#allocation9], 0 }
   0x7   :  { %18 = vsyncpa [#allocation4], 0 }
   0x8   :  { %20 = vsyncpa [#allocation4 + $0x1], 0  ;;  %s1756_s27 = smov 0   ;;  %s1758_s28 = smov 0  }
   0x9   :  { %s1760_s29 = smov 0   ;;  %s1762_s30 = smov 0  }
   0xa LB: > { %s1777_s9 = sadd.s32 4294967295, %s1686_s30   ;;  %s1292_s10 = sadd.s32 4294967294, %s1686_s30   ;;  %s1686_s30 = sphi %s1762_s30, %s2337_s30   ;;  %s1682_s29 = sphi %s1760_s29, %s2336_s29   ;;  %s1678_s28 = sphi %s1758_s28, %s2335_s28   ;;  %s1674_s27 = sphi %s1756_s27, %s2334_s27  }
   0xb   : > { %p46_p0 = scmp.ne.s32.totalorder %s1678_s28, %s1674_s27  ;;  %p2306_p1 = scmp.eq.s32.totalorder %s1777_s9, 0 }
   0xc   : > { %p228_p3 = scmp.eq.s32.totalorder %s1292_s10, 1  ;;  %p1293_p5 = scmp.ge.s32.totalorder %s1686_s30, 1 }
   0xd   : > { %p1786_p4 = por %p2306_p1, %p46_p0  ;;  %p235_p7 = scmp.lt.s32.totalorder %s1686_s30, 3 }
   0xe   : > { %p1791_p6 = por %p228_p3, %p46_p0  ;;  %s1688_s14 = smov [#allocation5]  }
   0xf   : > { %s2314_s11 = scalar_select %p1786_p4, 1, 0 }
  0x10   : > { %s2315_s12 = scalar_select %p1791_p6, 1, 0 }
  0x11   : > { %p1796_p8 = pnand %p1293_p5, %p235_p7  ;;  %s247_s15 = sshll.u32 %s1688_s14, 4  ;;  %s248_s15 = int_to_ptr.vmem [resolvable:$true] %s247_s15 }
  0x12   : > { %s1689_s17 = smov [#allocation8]   ;;  %s1690_s19 = smov [#allocation7]  }
  0x13   : > { %s2316_s13 = scalar_select %p1796_p8, 1, 0 }
  0x14   : > { %p1359_p9 = pneg %p1796_p8  ;;  %s275_s18 = sshll.u32 %s1689_s17, 4  ;;  %s276_s18 = int_to_ptr.vmem [resolvable:$true] %s275_s18 }
  0x15   : > { %s264_s20 = sshll.u32 %s1690_s19, 4  ;;  %s1493_s21 = scalar_lea.vmem %s248_s15, 512  ;;  %s265_s20 = int_to_ptr.vmem [resolvable:$true] %s264_s20 }
  0x16   : > { %p1805_p11 = pnand %p1359_p9, %p2306_p1  ;;  %p1494_p13 = scmp.ne.s32.totalorder %s248_s15, %s1493_s21 }
  0x17   : > { %p1501_p5 = scmp.lt.s32.totalorder %s248_s15, %s248_s15  ;;  %p1502_p7 = scmp.lt.s32.totalorder %s1493_s21, %s1493_s21 }
  0x18   : > { %p1484_p12 = pneg %p1805_p11 }
  0x19   : > { %p1503_p9 = por %p1502_p7, %p1501_p5 }
  0x1a   : > { %p1496_p0 = pnand %p1494_p13, %p1484_p12 }
  0x1c   : > { %p1497_p3 = pneg %p1496_p0 }
  0x1e   : > { %p1504_p10 = pnand %p1503_p9, %p1497_p3 }
  0x20   : > { %1507 = shalt.err (!%p1504_p10)
}
  0x21   : > { %s2308_s22 = smov 256   ;;  %s2309_s23 = smov 16  }
  0x22   : > { %s2318_s1 = sld [smem:[#allocation16_spill]]  ;;  %s1519_s26 = scalar_lea.vmem %s276_s18, 32 }
  0x23   : > { %p1520_p13 = scmp.ne.s32.totalorder %s276_s18, %s1519_s26  ;;  %p1527_p3 = scmp.lt.s32.totalorder %s276_s18, %s276_s18 }
  0x24   : > { %p1528_p10 = scmp.lt.s32.totalorder %s1519_s26, %s1519_s26 }
  0x25   : > { %p1522_p0 = pnand %p1520_p13, %p1484_p12 }
  0x26   : > { %p1529_p7 = por %p1528_p10, %p1527_p3 }
  0x27   : > { %p1523_p5 = pneg %p1522_p0 }
  0x28   : > { %1362 = dma.hbm_to_vmem [thread:$0]  (!%p1805_p11), %s2318_s1, 512, %s248_s15, [#allocation6], %s2308_s22, %s2308_s22, %s2309_s23  }
  0x29   : > { %p1530_p9 = pnand %p1529_p7, %p1523_p5 }
  0x2b   : > { %1533 = shalt.err (!%p1530_p9)
}
  0x2c   : > { %1368 = dma.hbm_to_vmem [thread:$0]  (!%p1805_p11), %s2301_s4, 32, %s276_s18, [#allocation9]  }
  0x2d   : > { %s1545_s15 = scalar_lea.vmem %s265_s20, 32  ;;  %p1553_p0 = scmp.lt.s32.totalorder %s265_s20, %s265_s20 }
  0x2e   : > { %p1546_p1 = scmp.ne.s32.totalorder %s265_s20, %s1545_s15  ;;  %p1554_p6 = scmp.lt.s32.totalorder %s1545_s15, %s1545_s15 }
  0x30   : > { %p1548_p2 = pnand %p1546_p1, %p1484_p12  ;;  %p1555_p4 = por %p1554_p6, %p1553_p0 }
  0x32   : > { %p1549_p13 = pneg %p1548_p2 }
  0x34   : > { %p1556_p3 = pnand %p1555_p4, %p1549_p13 }
  0x36   : > { %1559 = shalt.err (!%p1556_p3)
}
  0x37   : > { %s2319_s3 = sld [smem:[#allocation17_spill]]  ;;  %s1693_s18 = smov [#allocation10]  }
  0x38   : > { %s286_s21 = sshll.u32 %s1693_s18, 4  ;;  %s287_s21 = int_to_ptr.vmem [resolvable:$true] %s286_s21 }
  0x39   : > { %s1571_s24 = scalar_lea.vmem %s287_s21, 32  ;;  %p1579_p10 = scmp.lt.s32.totalorder %s287_s21, %s287_s21 }
  0x3a   : > { %p1572_p5 = scmp.ne.s32.totalorder %s287_s21, %s1571_s24  ;;  %p1580_p6 = scmp.lt.s32.totalorder %s1571_s24, %s1571_s24 }
  0x3c   : > { %p1574_p1 = pnand %p1572_p5, %p1484_p12  ;;  %p1581_p4 = por %p1580_p6, %p1579_p10 }
  0x3d   : > { %1365 = dma.hbm_to_vmem [thread:$0]  (!%p1805_p11), %s2319_s3, 32, %s265_s20, [#allocation6]  }
  0x3e   : > { %p1575_p2 = pneg %p1574_p1 }
  0x40   : > { %p1582_p7 = pnand %p1581_p4, %p1575_p2 }
  0x42   : > { %1585 = shalt.err (!%p1582_p7)
}
  0x43   : > { %1371 = dma.hbm_to_vmem [thread:$0]  (!%p1805_p11), %s2302_s5, 32, %s287_s21, [#allocation9]  }
  0x44   : > { %s1847_s20 = sadd.s32 1, %s1686_s30   ;;  %s33_s10 = sadd.s32 1, %s1682_s29 }
  0x45   : > { %s30_s16 = ssub.s32 %s1686_s30, %s1847_s20  ;;  %p40_p12 = scmp.ne.s32.totalorder %s1682_s29, %s1678_s28 }
  0x46   : > { %p31_p9 = scmp.eq.s32.totalorder %s30_s16, 0  ;;  %p41_p13 = scmp.eq.s32.totalorder %s1686_s30, 0 }
  0x47   : > { %p2320_p0 = scmp.eq.s32.totalorder %s1777_s9, 1  ;;  %p1384_p5 = scmp.lt.s32.totalorder %s1686_s30, 2 }
  0x48   : > { %s1863_s15 = scalar_select %p31_p9, %s1682_s29, %s33_s10  }
  0x49   : > { %p1857_p3 = por %p2320_p0, %p40_p12  ;;  %p42_p1 = por %p41_p13, %p40_p12 }
  0x4a   : > { %s300_s17 = sand.u32 1, %s1682_s29   ;;  %s1337_s18 = sshll.u32 %s1686_s30, 9 }
  0x4b   : > { %s2321_s14 = scalar_select %p1857_p3, 1, 0 }
  0x4c   : > { %s1299_s19 = sshll.u32 %s300_s17, 5  ;;  %s1870_s25 = scalar_lea.hbm %s2297_s0, %s1337_s18 }
  0x4d   : > { %s304_s26 = scalar_lea.vmem [#allocation2], %s1299_s19  ;;  %p1874_p11 = pnand %p1384_p5, %p42_p1 }
  0x4e   : > { %s311_s16 = sshll.u32 %s304_s26, 4  ;;  %s1878_s10 = scalar_lea.sflag [#allocation3], %s300_s17  ;;  %s1872_s16 = int_to_ptr.vmem [resolvable:$true] %s311_s16 }
  0x4f   : > { %s1586_s23 = scalar_lea.hbm %s1870_s25, 512  ;;  %p1588_p10 = pneg %p1874_p11 }
  0x50   : > { %p1587_p2 = scmp.ne.s32.totalorder %s1870_s25, %s1586_s23  ;;  %s1591_s19 = scalar_lea.hbm %s2297_s0, 1024 }
  0x51   : > { %p1592_p7 = scmp.lt.s32.totalorder %s1870_s25, %s2297_s0  ;;  %p1593_p12 = scmp.lt.s32.totalorder %s1591_s19, %s1586_s23 }
  0x52   : > { %p1589_p6 = pnand %p1588_p10, %p1587_p2 }
  0x53   : > { %p1594_p9 = por %p1593_p12, %p1592_p7 }
  0x54   : > { %p1590_p4 = pneg %p1589_p6 }
  0x56   : > { %p1595_p13 = pnand %p1594_p9, %p1590_p4 }
  0x58   : > { %1598 = shalt.err (!%p1595_p13)
}
  0x59   : > { %s1599_s17 = scalar_lea.vmem %s1872_s16, 512  ;;  %s1694_s1 = smov [#allocation2]  }
  0x5a   : > { %p1600_p0 = scmp.ne.s32.totalorder %s1872_s16, %s1599_s17  ;;  %s1604_s3 = sshll.u32 %s1694_s1, 4  ;;  %s1605_s3 = int_to_ptr.vmem [resolvable:$false] %s1604_s3 }
  0x5b   : > { %s1606_s18 = scalar_lea.vmem %s1605_s3, 1024  ;;  %p1607_p2 = scmp.lt.s32.totalorder %s1872_s16, %s1605_s3 }
  0x5c   : > { %p1602_p5 = pnand %p1600_p0, %p1588_p10  ;;  %p1608_p6 = scmp.lt.s32.totalorder %s1606_s18, %s1599_s17 }
  0x5e   : > { %p1603_p1 = pneg %p1602_p5  ;;  %p1609_p3 = por %p1608_p6, %p1607_p2 }
  0x60   : > { %p1610_p8 = pnand %p1609_p3, %p1603_p1 }
  0x62   : > { %1613 = shalt.err (!%p1610_p8)
}
  0x63   : > { %s2323_s23 = smov 16   ;;  %s2324_s21 = smov 256  }
  0x64   : > { %1375 = dma.hbm_to_vmem [thread:$0]  (!%p1874_p11), %s1870_s25, 512, %s1872_s16, %s1878_s10, %s2324_s21, %s2324_s21, %s2323_s23  }
  0x65   : > { %p2325_p10 = scmp.ne.s32.totalorder %s2316_s13, 0 }
  0x66   : > { %s1905_s1 = sand.u32 (!%p2325_p10), 1, %s1678_s28   ;;  %p2326_p8 = scmp.ne.s32.totalorder (!%p2325_p10), %s2314_s11, 0 }
  0x67   : > { %330 = sbr.rel (%p2325_p10) target bundleno = 2574 (0xa0e), region = 52  ;;  %s1303_s3 = sshll.u32 (!%p2325_p10), %s1905_s1, 5 }
  0x68   : > { %s333_s19 = scalar_lea.sflag (!%p2325_p10), [#allocation3], %s1905_s1  ;;  %s336_s22 = scalar_lea.vmem (!%p2325_p10), [#allocation2], %s1303_s3 }
  0x6c   : > { %1657 = dma.done.wait (%p2326_p8), %s333_s19, 512  }
  0x6d   : > { %1659 = vsyncadd (%p2326_p8), %s333_s19, 4294966784  ;;  %p2327_p3 = scmp.eq.s32.totalorder %s1777_s9, 0 }
  0x6f   : > { %1661 = dma.done.wait (%p2327_p3), [#allocation6], 544   ;;  %p2328_p11 = pmov %p2327_p3 }
  0x70   : > { %p2329_p4 = pmov %p2327_p3 }
  0x71   : > { %1663 = vsyncadd (%p2328_p11), [#allocation6], 4294966752 }
  0x72   : > { %1665 = dma.done.wait (%p2329_p4), [#allocation9], 64   ;;  %p2330_p7 = pmov %p2327_p3 }
  0x73   : > { %v1923_v0 = vld [vmem:[%s336_s22] sm:$0xff]  ;;  %v1925_v1 = vld [vmem:[%s336_s22 + $0x8] sm:$0xff]  ;;  %v1927_v2 = vld [vmem:[%s336_s22 + $0x10] sm:$0xff]  ;;  %v1695_v20 = vmov 0   ;;  %vm412_vm0 = vcmask 130048   ;;  %vm567_vm1 = vcmask 1043456  }
  0x74   : > { %1667 = vsyncadd (%p2330_p7), [#allocation9], 4294967232  ;;  %v487_v3 = vadd.f32 %v1925_v1, %v1923_v0  ;;  %v1931_v4 = vld [vmem:[%s336_s22 + $0x18] sm:$0xff]  ;;  %558 = vmatprep.mubr.bf16.mxu1 %v1695_v20  ;;  %1443 = vset.pattern.permute.xlu0 %v1695_v20  ;;  %v520_v35 = vld [vmem:[#allocation7] sm:$0x3]  ;;  %p389_p12 = scmp.lt.s32.totalorder %s1777_s9, 1 }
  0x75   : > { %v490_v5 = vadd.f32 %v1931_v4, %v1927_v2  ;;  %448 = vmatprep.mubr.bf16.mxu0 %v1695_v20  ;;  %v1696_v43 = vmov 1   ;;  %s1697_s17 = smov 111   ;;  %s1698_s18 = smov 113   ;;  %vm796_vm5 = vcmask 1041408   ;;  %vm792_vm13 = vcmask 293888  }
  0x76   : > { %488 = vadd.xlane.f32.xlu0 %v487_v3  ;;  %1444 = vset.pattern.permute.xlu1 %v1696_v43  ;;  %s390_s11 = scalar_select %p389_p12, %s1777_s9, 1 }
  0x77   : > { %s1699_s23 = smov 16   ;;  %s1700_s21 = smov 127  }
  0x78   : > { %s1309_s13 = sshll.u32 %s390_s11, 2  ;;  %s1701_s19 = smov 1  }
  0x79   : > { %s392_s10 = scalar_lea.vmem %s2304_s7, %s1309_s13  ;;  %s1702_s22 = smov 17  }
  0x7a   : > { %491 = vadd.xlane.f32.xlu0 %v490_v5  ;;  %v1951_v44 = vld [vmem:[%s392_s10] sm:$0xf]  ;;  %s1703_s11 = smov 112   ;;  %s1704_s13 = smov 15  }
  0x7b   : > { %s388_s10 = scalar_lea.vmem [#allocation11], %s1303_s3  ;;  %s1338_s26 = sshll.u32 %s1777_s9, 9 }
  0x7c   : > { %s1169_s24 = sshll.u32 %s388_s10, 4  ;;  %p2331_p13 = scmp.ne.s32.totalorder %s2321_s14, 0  ;;  %s2248_s24 = int_to_ptr.vmem [resolvable:$true] %s1169_s24 }
  0x7d   : > { %s1709_s9 = smov [#allocation11]  }
  0xff   : > { %v489_v6 = vpop.xlane.xlu0 %488 }
 0x100   : > { %v494_v7 = vmul.f32 0.00390625, %v489_v6 }
 0x102   : > { %v496_v8 = vsub.f32 %v1923_v0, %v494_v7  ;;  %v497_v9 = vsub.f32 %v1925_v1, %v494_v7 }
 0x103   : > { %v492_v10 = vpop.xlane.xlu0 %491 }
 0x104   : > { %v495_v11 = vmul.f32 0.00390625, %v492_v10  ;;  %v500_v12 = vmul.f32 %v496_v8, %v496_v8  ;;  %v501_v13 = vmul.f32 %v497_v9, %v497_v9  ;;  %v405_v10 = vpack.c.bf16 %v1927_v2, %v1923_v0 }
 0x106   : > { %v498_v14 = vsub.f32 %v1927_v2, %v495_v11  ;;  %v499_v15 = vsub.f32 %v1931_v4, %v495_v11  ;;  %v504_v16 = vadd.f32 %v501_v13, %v500_v12  ;;  %v619_v2 = vlaneseq }
 0x108   : > { %505 = vadd.xlane.f32.xlu1 %v504_v16  ;;  %v502_v17 = vmul.f32 %v498_v14, %v498_v14  ;;  %v503_v18 = vmul.f32 %v499_v15, %v499_v15  ;;  %v1450_v16 = vld [vmem:[%s2299_s2] sm:$0xff]  }
 0x10a   : > { %v507_v19 = vadd.f32 %v503_v18, %v502_v17 }
 0x10c   : > { %508 = vadd.xlane.f32.xlu1 %v507_v19 }
 0x191   : > { %v506_v21 = vpop.xlane.xlu1 %505 }
 0x192   : > { %v510_v22 = vmul.f32 0.00390625, %v506_v21  ;;  %v2005_v21 = vld [vmem:[#allocation5 + $0x10] ss:$0 sm:$0xff] }
 0x194   : > { %v512_v23 = vadd.f32 1e-05, %v510_v22  ;;  %v2007_v22 = vld [vmem:[#allocation5 + $0x18] ss:$0 sm:$0xff] }
 0x195   : > { %v509_v24 = vpop.xlane.xlu1 %508 }
 0x196   : > { %v511_v25 = vmul.f32 0.00390625, %v509_v24  ;;  %1452 = vrsqrt.f32 %v512_v23 }
 0x198   : > { %v513_v26 = vadd.f32 1e-05, %v511_v25 }
 0x19a   : > { %1454 = vrsqrt.f32 %v513_v26 }
 0x1a3   : > { %v1453_v27 = vpop.eup %1452 }
 0x1a4   : > { %v517_v29 = vmul.f32 %v1453_v27, %v497_v9  ;;  %v516_v31 = vmul.f32 %v1453_v27, %v496_v8  ;;  %v406_v8 = vpack.c.bf16 %v1931_v4, %v1925_v1  ;;  %v2002_v4 = vand.u32 127, %v619_v2 }
 0x1a6   : > { %430 = vmatprep.subr.bf16.mxu0 %v406_v8  ;;  %vm740_vm4 = vcmp.lt.s32.totalorder %v2002_v4, 111  ;;  %vm689_vm6 = vcmp.lt.s32.totalorder %v2002_v4, 127  ;;  %vm723_vm7 = vcmp.lt.s32.totalorder %v2002_v4, 112  ;;  %vm706_vm8 = vcmp.lt.s32.totalorder %v2002_v4, 113 }
 0x1a7   : > { %v1455_v28 = vpop.eup %1454  ;;  %431 = vmatpush1.bf16.msra.mxu0 %v405_v10  ;;  %vm638_vm9 = vcmp.lt.s32.totalorder %v2002_v4, 16  ;;  %vm672_vm10 = vcmp.lt.s32.totalorder %v2002_v4, 1  ;;  %vm621_vm11 = vcmp.lt.s32.totalorder %v2002_v4, 17  ;;  %vm655_vm12 = vcmp.lt.s32.totalorder %v2002_v4, 15  ;;  %v992_v4 = vld [vmem:[#allocation10] sm:$0x3] }
 0x1a8   : > { %v519_v30 = vmul.f32 %v1455_v28, %v499_v15  ;;  %v518_v32 = vmul.f32 %v1455_v28, %v498_v14 }
 0x1aa   : > { %v522_v33 = vpack.c.bf16 %v519_v30, %v517_v29  ;;  %v521_v34 = vpack.c.bf16 %v518_v32, %v516_v31  ;;  %1311 = vmatmul.mubr.msk.bf16.vlgmr.msra.gmra.mxu0 %vm412_vm0, %v1450_v16  ;;  %v2015_v31 = vshrl.u32 %v619_v2, 7 }
 0x1ab   : > { %835 = vmatprep.mubr.bf16.mxu0 %v1695_v20 }
 0x1ac   : > { %540 = vmatprep.subr.bf16.mxu1 %v522_v33  ;;  %v694_v33 = vsub.s32 5, %v2015_v31 }
 0x1ad   : > { %541 = vmatpush1.bf16.msra.mxu1 %v521_v34 }
 0x1b0   : > { %1316 = vmatmul.mubr.msk.bf16.vlgmr.msra.gmra.mxu1 %vm412_vm0, %v520_v35  ;;  %v2020_v35 = vld [vmem:[#allocation5] sm:$0xff] }
 0x1b1   : > { %1034 = vmatprep.mubr.bf16.mxu1 %v1695_v20 }
 0x270   : > { %v560_v36 = vpop.f32.mrf.mxu1 }
 0x271   : > { %v568_v38 = vsel %vm567_vm1, %v560_v36, 0.0 }
 0x272   : > { %v562_v37 = vpop.f32.mrf.mxu1 }
 0x273   : > { %v569_v39 = vsel %vm567_vm1, %v562_v37, 0.0 }
 0x274   : > { %v564_v40 = vpop.f32.mrf.mxu1  ;;  %v570_v41 = vadd.f32 %v569_v39, %v568_v38  ;;  %v2027_v39 = vrot.slane %v2020_v35, %v694_v33 }
 0x276   : > { %571 = vadd.xlane.f32.xlu0 %v570_v41  ;;  %v565_v42 = vpop.f32.mrf.mxu1 }
 0x28c   : > { %590 = vperm.xlu0 %1443, %v1951_v44  }
 0x2ff   : > { %v572_v45 = vpop.xlane.xlu0 %571 }
 0x300   : > { %v573_v46 = vmul.f32 0.00390625, %v572_v45 }
 0x302   : > { %v574_v47 = vsub.f32 %v560_v36, %v573_v46  ;;  %v575_v48 = vsub.f32 %v562_v37, %v573_v46  ;;  %v2022_v36 = vld [vmem:[#allocation5 + $0x8] sm:$0xff]  ;;  %v728_v37 = vsub.s32 7, %v2015_v31 }
 0x303   : > { %v2030_v40 = vrot.slane %v2022_v36, %v694_v33 }
 0x304   : > { %v576_v49 = vmul.f32 %v574_v47, %v574_v47  ;;  %v577_v50 = vmul.f32 %v575_v48, %v575_v48  ;;  %v2038_v45 = vrot.slane %v2020_v35, %v728_v37  ;;  %v2041_v46 = vrot.slane %v2022_v36, %v728_v37 }
 0x306   : > { %v578_v51 = vsel %vm567_vm1, %v576_v49, 0.0  ;;  %v579_v52 = vsel %vm567_vm1, %v577_v50, 0.0 }
 0x307   : > { %v580_v53 = vadd.f32 %v579_v52, %v578_v51  ;;  %v591_v58 = vpop.permute.xlu0 %590 }
 0x309   : > { %581 = vadd.xlane.f32.xlu1 %v580_v53 }
 0x31a   : > { %596 = vperm.xlu1 %1444, %v1951_v44  }
 0x392   : > { %v582_v54 = vpop.xlane.xlu1 %581 }
 0x393   : > { %v583_v55 = vmul.f32 0.00390625, %v582_v54 }
 0x395   : > { %v584_v56 = vadd.f32 1e-05, %v583_v55 }
 0x396   : > { %v597_v61 = vpop.permute.xlu1 %596 }
 0x397   : > { %1456 = vrsqrt.f32 %v584_v56 }
 0x3a4   : > { %v1457_v57 = vpop.eup %1456 }
 0x3a5   : > { %v586_v59 = vmul.f32 %v1457_v57, %v574_v47  ;;  %v587_v60 = vmul.f32 %v1457_v57, %v575_v48  ;;  %v711_v47 = vsub.s32 6, %v2015_v31 }
 0x3a7   : > { %v593_v62 = vmul.f32 %v591_v58, %v586_v59  ;;  %v594_v63 = vmul.f32 %v591_v58, %v587_v60  ;;  %v2054_v56 = vrot.slane %v2020_v35, %v711_v47  ;;  %v2057_v57 = vrot.slane %v2022_v36, %v711_v47 }
 0x3a9   : > { %v599_v3 = vadd.f32 %v597_v61, %v593_v62  ;;  %v600_v5 = vadd.f32 %v597_v61, %v594_v63 }
 0x3ab   : > { %v603_v6 = vmul.f32 1.442695, %v599_v3  ;;  %v605_v7 = vmul.f32 1.442695, %v600_v5  ;;  %vm601_vm2 = vcmp.gt.f32.partialorder %v599_v3, 0.0  ;;  %vm602_vm3 = vcmp.gt.f32.partialorder %v600_v5, 0.0 }
 0x3ad   : > { %1458 = vpow2.f32 %v603_v6 }
 0x3ae   : > { %1460 = vpow2.f32 %v605_v7 }
 0x3ba   : > { %v1459_v9 = vpop.eup %1458 }
 0x3bb   : > { %v1461_v11 = vpop.eup %1460  ;;  %v1317_v12 = vadd.f32 -1.0, %v1459_v9 }
 0x3bc   : > { %v1318_v13 = vadd.f32 -1.0, %v1461_v11 }
 0x3bd   : > { %v609_v14 = vmul.f32 1.6732632, %v1317_v12 }
 0x3be   : > { %v610_v15 = vmul.f32 1.6732632, %v1318_v13  ;;  %v643_v13 = vsub.s32 1, %v2015_v31 }
 0x3bf   : > { %v611_v17 = vsel %vm601_vm2, %v599_v3, %v609_v14  ;;  %vm1098_vm2 = vcmask 31744  }
 0x3c0   : > { %v612_v18 = vsel %vm602_vm3, %v600_v5, %v610_v15  ;;  %v1964_v1 = vmul.f32 1.050701, %v611_v17  ;;  %v677_v15 = vsub.s32 3, %v2015_v31 }
 0x3c1   : > { %v1967_v0 = vmul.f32 1.050701, %v612_v18  ;;  %v626_v18 = vsub.s32 0, %v2015_v31 }
 0x3c2   : > { %736 = vrot.lane.b32.xlu1 %v1964_v1, %s1697_s17  ;;  %v2083_v2 = vrot.slane %v2020_v35, %v677_v15 }
 0x3c3   : > { %704 = vrot.lane.b32.xlu0 %v1967_v0, %s1698_s18 }
 0x3c6   : > { %738 = vrot.lane.b32.xlu1 %v1967_v0, %s1697_s17 }
 0x3c7   : > { %636 = vrot.lane.b32.xlu0 %v1967_v0, %s1699_s23 }
 0x3ca   : > { %685 = vrot.lane.b32.xlu1 %v1964_v1, %s1700_s21 }
 0x3cb   : > { %670 = vrot.lane.b32.xlu0 %v1967_v0, %s1701_s19 }
 0x3ce   : > { %687 = vrot.lane.b32.xlu1 %v1967_v0, %s1700_s21 }
 0x3cf   : > { %617 = vrot.lane.b32.xlu0 %v1967_v0, %s1702_s22 }
 0x3d2   : > { %719 = vrot.lane.b32.xlu1 %v1964_v1, %s1703_s11 }
 0x3d3   : > { %653 = vrot.lane.b32.xlu0 %v1967_v0, %s1704_s13 }
 0x3d6   : > { %721 = vrot.lane.b32.xlu1 %v1967_v0, %s1703_s11 }
 0x3da   : > { %702 = vrot.lane.b32.xlu1 %v1964_v1, %s1698_s18 }
 0x3de   : > { %634 = vrot.lane.b32.xlu1 %v1964_v1, %s1699_s23 }
 0x3e2   : > { %668 = vrot.lane.b32.xlu1 %v1964_v1, %s1701_s19 }
 0x3e6   : > { %615 = vrot.lane.b32.xlu1 %v1964_v1, %s1702_s22 }
 0x3ea   : > { %651 = vrot.lane.b32.xlu1 %v1964_v1, %s1704_s13 }
 0x434   : > { %v737_v19 = vpop.permute.xlu1 %736 }
 0x435   : > { %v705_v38 = vpop.permute.xlu0 %704 }
 0x438   : > { %v739_v23 = vpop.permute.xlu1 %738 }
 0x439   : > { %v741_v24 = vsel %vm740_vm4, %v737_v19, %v739_v23  ;;  %v742_v25 = vsel %vm740_vm4, %v739_v23, %v737_v19  ;;  %v637_v53 = vpop.permute.xlu0 %636  ;;  %v2086_v19 = vrot.slane %v2022_v36, %v677_v15 }
 0x43a   : > { %v751_v26 = vmul.f32 %v2005_v21, %v741_v24  ;;  %v752_v27 = vmul.f32 %v2007_v22, %v742_v25 }
 0x43c   : > { %v789_v28 = vpack.c.bf16 %v751_v26, %v751_v26  ;;  %v790_v29 = vpack.c.bf16 %v752_v27, %v752_v27  ;;  %v686_v30 = vpop.permute.xlu1 %685  ;;  %v660_v26 = vsub.s32 2, %v2015_v31 }
 0x43d   : > { %v671_v7 = vpop.permute.xlu0 %670 }
 0x43e   : > { %1321 = vmatprep.subr.msk.bf16.mxu0 %vm796_vm5, %v790_v29  ;;  %v798_v32 = vsel %vm796_vm5, %v789_v28, 0  ;;  %v2099_v29 = vrot.slane %v2020_v35, %v626_v18 }
 0x43f   : > { %814 = vmatpush1.bf16.msra.mxu0 %v798_v32 }
 0x440   : > { %v688_v34 = vpop.permute.xlu1 %687 }
 0x441   : > { %v690_v42 = vsel %vm689_vm6, %v686_v30, %v688_v34  ;;  %v691_v43 = vsel %vm689_vm6, %v688_v34, %v686_v30  ;;  %v618_v23 = vpop.permute.xlu0 %617  ;;  %v2102_v30 = vrot.slane %v2022_v36, %v626_v18 }
 0x442   : > { %v700_v48 = vmul.f32 %v2027_v39, %v690_v42  ;;  %v701_v49 = vmul.f32 %v2030_v40, %v691_v43  ;;  %v2114_v42 = vrot.slane %v2020_v35, %v660_v26  ;;  %v2117_v43 = vrot.slane %v2022_v36, %v660_v26 }
 0x444   : > { %v720_v41 = vpop.permute.xlu1 %719  ;;  %v767_v58 = vrot.slane %v700_v48, 4  ;;  %v768_v59 = vrot.slane %v701_v49, 4 }
 0x445   : > { %v654_v47 = vpop.permute.xlu0 %653 }
 0x446   : > { %v781_v8 = vsel %vm567_vm1, %v1964_v1, %v767_v58  ;;  %v782_v11 = vsel %vm567_vm1, %v1967_v0, %v768_v59  ;;  %v2077_v1 = vrot.slane %v2020_v35, %v643_v13  ;;  %v2080_v0 = vrot.slane %v2022_v36, %v643_v13 }
 0x448   : > { %v722_v50 = vpop.permute.xlu1 %721 }
 0x449   : > { %v724_v51 = vsel %vm723_vm7, %v720_v41, %v722_v50  ;;  %v725_v52 = vsel %vm723_vm7, %v722_v50, %v720_v41 }
 0x44a   : > { %v734_v54 = vmul.f32 %v2038_v45, %v724_v51  ;;  %v735_v55 = vmul.f32 %v2041_v46, %v725_v52 }
 0x44c   : > { %v703_v60 = vpop.permute.xlu1 %702  ;;  %v773_v63 = vrot.slane %v734_v54, 4  ;;  %v774_v3 = vrot.slane %v735_v55, 4 }
 0x44d   : > { %v707_v61 = vsel %vm706_vm8, %v703_v60, %v705_v38  ;;  %v708_v62 = vsel %vm706_vm8, %v705_v38, %v703_v60 }
 0x44e   : > { %v717_v5 = vmul.f32 %v2054_v56, %v707_v61  ;;  %v718_v6 = vmul.f32 %v2057_v57, %v708_v62 }
 0x450   : > { %v783_v9 = vsel %vm567_vm1, %v717_v5, %v773_v63  ;;  %v635_v10 = vpop.permute.xlu1 %634  ;;  %v784_v12 = vsel %vm567_vm1, %v718_v6, %v774_v3  ;;  %v791_v5 = vld [vmem:[#allocation8] sm:$0x3]  ;;  %v2133_v6 = vpop.f32.mrf.mxu0 }
 0x451   : > { %v788_v14 = vpack.c.bf16 %v784_v12, %v782_v11  ;;  %v787_v16 = vpack.c.bf16 %v783_v9, %v781_v8  ;;  %v639_v24 = vsel %vm638_vm9, %v635_v10, %v637_v53  ;;  %v640_v25 = vsel %vm638_vm9, %v637_v53, %v635_v10 }
 0x452   : > { %v649_v33 = vmul.f32 %v2077_v1, %v640_v25  ;;  %v650_v34 = vmul.f32 %v2080_v0, %v639_v24  ;;  %vm459_vm3 = vcmp.gt.f32.partialorder %v2133_v6, 0.0 }
 0x453   : > { %815 = vmatprep.subr.bf16.mxu0 %v788_v14 }
 0x454   : > { %v669_v17 = vpop.permute.xlu1 %668  ;;  %816 = vmatpush1.bf16.msra.mxu0 %v787_v16  ;;  %v755_v51 = vrot.slane %v649_v33, 4  ;;  %v756_v52 = vrot.slane %v650_v34, 4 }
 0x455   : > { %v673_v27 = vsel %vm672_vm10, %v669_v17, %v671_v7  ;;  %v674_v28 = vsel %vm672_vm10, %v671_v7, %v669_v17  ;;  %v2135_v7 = vpop.f32.mrf.mxu0  ;;  %v1705_v17 = vmov 2  }
 0x456   : > { %v683_v38 = vmul.f32 %v2083_v2, %v674_v28  ;;  %v684_v41 = vmul.f32 %v2086_v19, %v673_v27  ;;  %1445 = vset.pattern.permute.xlu0 %v1705_v17 }
 0x457   : > { %v2137_v8 = vpop.f32.mrf.mxu0 }
 0x458   : > { %v616_v32 = vpop.permute.xlu1 %615  ;;  %v761_v55 = vrot.slane %v683_v38, 4  ;;  %v762_v35 = vrot.slane %v684_v41, 4 }
 0x459   : > { %v622_v31 = vsel %vm621_vm11, %v616_v32, %v618_v23  ;;  %v623_v37 = vsel %vm621_vm11, %v618_v23, %v616_v32  ;;  %v2139_v9 = vpop.f32.mrf.mxu0 }
 0x45a   : > { %v632_v48 = vmul.f32 %v2099_v29, %v623_v37  ;;  %v633_v49 = vmul.f32 %v2102_v30, %v622_v31 }
 0x45c   : > { %v652_v50 = vpop.permute.xlu1 %651  ;;  %v777_v59 = vsel %vm567_vm1, %v632_v48, %v755_v51  ;;  %v778_v61 = vsel %vm567_vm1, %v633_v49, %v756_v52 }
 0x45d   : > { %v656_v53 = vsel %vm655_vm12, %v652_v50, %v654_v47  ;;  %v657_v54 = vsel %vm655_vm12, %v654_v47, %v652_v50 }
 0x45e   : > { %v666_v58 = vmul.f32 %v2114_v42, %v657_v54  ;;  %v667_v36 = vmul.f32 %v2117_v43, %v656_v53 }
 0x460   : > { %v779_v60 = vsel %vm567_vm1, %v666_v58, %v761_v55  ;;  %v780_v62 = vsel %vm567_vm1, %v667_v36, %v762_v35 }
 0x461   : > { %v786_v63 = vpack.c.bf16 %v780_v62, %v778_v61  ;;  %v785_v3 = vpack.c.bf16 %v779_v60, %v777_v59 }
 0x463   : > { %817 = vmatprep.subr.bf16.mxu0 %v786_v63 }
 0x464   : > { %818 = vmatpush1.bf16.msra.mxu0 %v785_v3 }
 0x467   : > { %1322 = vmatmul.mubr.msk.bf16.vlgmr.msra.gmra.mxu0 %vm792_vm13, %v791_v5 }
 0x468   : > { %1140 = vmatprep.mubr.bf16.mxu0 %v1695_v20  ;;  %v1706_v20 = vmov 3  }
 0x469   : > { %1446 = vset.pattern.permute.xlu1 %v1706_v20 }
 0x527   : > { %v837_v10 = vpop.f32.mrf.mxu0 }
 0x528   : > { %v844_v12 = vsel %vm567_vm1, %v837_v10, 0.0 }
 0x529   : > { %v839_v11 = vpop.f32.mrf.mxu0 }
 0x52a   : > { %v845_v13 = vsel %vm567_vm1, %v839_v11, 0.0 }
 0x52b   : > { %v841_v14 = vpop.f32.mrf.mxu0  ;;  %v846_v15 = vadd.f32 %v845_v13, %v844_v12 }
 0x52d   : > { %847 = vadd.xlane.f32.xlu1 %v846_v15  ;;  %v842_v16 = vpop.f32.mrf.mxu0 }
 0x53e   : > { %871 = vperm.xlu1 %1446, %v1951_v44  }
 0x5b6   : > { %v848_v18 = vpop.xlane.xlu1 %847 }
 0x5b7   : > { %v849_v23 = vmul.f32 0.00390625, %v848_v18 }
 0x5b9   : > { %v850_v24 = vsub.f32 %v837_v10, %v849_v23  ;;  %v851_v25 = vsub.f32 %v839_v11, %v849_v23 }
 0x5ba   : > { %v872_v49 = vpop.permute.xlu1 %871 }
 0x5bb   : > { %v852_v26 = vmul.f32 %v850_v24, %v850_v24  ;;  %v853_v27 = vmul.f32 %v851_v25, %v851_v25 }
 0x5bd   : > { %v854_v28 = vsel %vm567_vm1, %v852_v26, 0.0  ;;  %v855_v32 = vsel %vm567_vm1, %v853_v27, 0.0 }
 0x5be   : > { %v856_v33 = vadd.f32 %v855_v32, %v854_v28 }
 0x5c0   : > { %857 = vadd.xlane.f32.xlu0 %v856_v33 }
 0x5d6   : > { %865 = vperm.xlu0 %1445, %v1951_v44  }
 0x649   : > { %v858_v34 = vpop.xlane.xlu0 %857 }
 0x64a   : > { %v859_v31 = vmul.f32 0.00390625, %v858_v34 }
 0x64c   : > { %v860_v37 = vadd.f32 1e-05, %v859_v31 }
 0x64e   : > { %1462 = vrsqrt.f32 %v860_v37 }
 0x651   : > { %v866_v41 = vpop.permute.xlu0 %865 }
 0x65b   : > { %v1463_v38 = vpop.eup %1462 }
 0x65c   : > { %v862_v47 = vmul.f32 %v1463_v38, %v850_v24  ;;  %v863_v48 = vmul.f32 %v1463_v38, %v851_v25 }
 0x65e   : > { %v868_v50 = vmul.f32 %v866_v41, %v862_v47  ;;  %v869_v51 = vmul.f32 %v866_v41, %v863_v48 }
 0x660   : > { %v874_v52 = vadd.f32 %v872_v49, %v868_v50  ;;  %v875_v53 = vadd.f32 %v872_v49, %v869_v51 }
 0x662   : > { %v878_v54 = vmul.f32 1.442695, %v874_v52  ;;  %v880_v55 = vmul.f32 1.442695, %v875_v53  ;;  %vm876_vm14 = vcmp.gt.f32.partialorder %v874_v52, 0.0  ;;  %vm877_vm15 = vcmp.gt.f32.partialorder %v875_v53, 0.0 }
 0x664   : > { %1464 = vpow2.f32 %v878_v54 }
 0x665   : > { %1466 = vpow2.f32 %v880_v55 }
 0x671   : > { %v1465_v35 = vpop.eup %1464 }
 0x672   : > { %v1467_v58 = vpop.eup %1466  ;;  %v1323_v36 = vadd.f32 -1.0, %v1465_v35 }
 0x673   : > { %v1324_v59 = vadd.f32 -1.0, %v1467_v58 }
 0x674   : > { %v884_v60 = vmul.f32 1.6732632, %v1323_v36 }
 0x675   : > { %v885_v61 = vmul.f32 1.6732632, %v1324_v59 }
 0x676   : > { %v886_v62 = vsel %vm876_vm14, %v874_v52, %v884_v60 }
 0x677   : > { %v887_v63 = vsel %vm877_vm15, %v875_v53, %v885_v61  ;;  %v888_v3 = vmul.f32 1.050701, %v886_v62 }
 0x678   : > { %v889_v5 = vmul.f32 1.050701, %v887_v63 }
 0x679   : > { %946 = vrot.lane.b32.xlu1 %v888_v3, %s1697_s17 }
 0x67a   : > { %932 = vrot.lane.b32.xlu0 %v889_v5, %s1698_s18 }
 0x67d   : > { %948 = vrot.lane.b32.xlu1 %v889_v5, %s1697_s17 }
 0x67e   : > { %900 = vrot.lane.b32.xlu0 %v889_v5, %s1699_s23 }
 0x681   : > { %922 = vrot.lane.b32.xlu1 %v888_v3, %s1700_s21 }
 0x682   : > { %916 = vrot.lane.b32.xlu0 %v889_v5, %s1701_s19 }
 0x685   : > { %924 = vrot.lane.b32.xlu1 %v889_v5, %s1700_s21  ;;  %s1156_s21 = scalar_lea.sflag [#allocation4], %s1905_s1 }
 0x686   : > { %892 = vrot.lane.b32.xlu0 %v889_v5, %s1702_s22 }
 0x689   : > { %938 = vrot.lane.b32.xlu1 %v888_v3, %s1703_s11 }
 0x68a   : > { %908 = vrot.lane.b32.xlu0 %v889_v5, %s1704_s13 }
 0x68d   : > { %940 = vrot.lane.b32.xlu1 %v889_v5, %s1703_s11 }
 0x691   : > { %930 = vrot.lane.b32.xlu1 %v888_v3, %s1698_s18  ;;  %s2253_s18 = scalar_lea.hbm %s2305_s8, %s1338_s26 }
 0x695   : > { %898 = vrot.lane.b32.xlu1 %v888_v3, %s1699_s23 }
 0x699   : > { %914 = vrot.lane.b32.xlu1 %v888_v3, %s1701_s19  ;;  %s1614_s19 = scalar_lea.vmem %s2248_s24, 512 }
 0x69a   : > { %p1615_p9 = scmp.ne.s32.totalorder %s2248_s24, %s1614_s19 }
 0x69c   : > { %p1616_p0 = pnand %p1615_p9, %p2331_p13 }
 0x69d   : > { %890 = vrot.lane.b32.xlu1 %v888_v3, %s1702_s22  ;;  %s1618_s22 = sshll.u32 %s1709_s9, 4  ;;  %s1619_s22 = int_to_ptr.vmem [resolvable:$false] %s1618_s22 }
 0x69e   : > { %p1617_p5 = pneg %p1616_p0  ;;  %s1620_s11 = scalar_lea.vmem %s1619_s22, 1024 }
 0x69f   : > { %p1621_p1 = scmp.lt.s32.totalorder %s2248_s24, %s1619_s22  ;;  %p1622_p2 = scmp.lt.s32.totalorder %s1620_s11, %s1614_s19 }
 0x6a1   : > { %906 = vrot.lane.b32.xlu1 %v888_v3, %s1704_s13  ;;  %p1623_p6 = por %p1622_p2, %p1621_p1 }
 0x6a3   : > { %p1624_p10 = pnand %p1623_p6, %p1617_p5 }
 0x6eb   : > { %v947_v10 = vpop.permute.xlu1 %946 }
 0x6ec   : > { %v933_v24 = vpop.permute.xlu0 %932 }
 0x6ef   : > { %v949_v11 = vpop.permute.xlu1 %948 }
 0x6f0   : > { %v950_v12 = vsel %vm740_vm4, %v947_v10, %v949_v11  ;;  %v951_v13 = vsel %vm740_vm4, %v949_v11, %v947_v10  ;;  %v901_v34 = vpop.permute.xlu0 %900  ;;  %vm460_vm4 = vcmp.gt.f32.partialorder %v2135_v7, 0.0 }
 0x6f1   : > { %v952_v14 = vmul.f32 %v2005_v21, %v950_v12  ;;  %v953_v15 = vmul.f32 %v2007_v22, %v951_v13 }
 0x6f3   : > { %v990_v16 = vpack.c.bf16 %v952_v14, %v952_v14  ;;  %v991_v17 = vpack.c.bf16 %v953_v15, %v953_v15  ;;  %v923_v20 = vpop.permute.xlu1 %922 }
 0x6f4   : > { %v917_v52 = vpop.permute.xlu0 %916 }
 0x6f5   : > { %1325 = vmatprep.subr.msk.bf16.mxu1 %vm796_vm5, %v991_v17  ;;  %v997_v18 = vsel %vm796_vm5, %v990_v16, 0 }
 0x6f6   : > { %1013 = vmatpush1.bf16.msra.mxu1 %v997_v18 }
 0x6f7   : > { %v925_v23 = vpop.permute.xlu1 %924 }
 0x6f8   : > { %v926_v26 = vsel %vm689_vm6, %v923_v20, %v925_v23  ;;  %v927_v27 = vsel %vm689_vm6, %v925_v23, %v923_v20  ;;  %v893_v59 = vpop.permute.xlu0 %892  ;;  %vm462_vm6 = vcmp.gt.f32.partialorder %v2139_v9, 0.0 }
 0x6f9   : > { %v928_v21 = vmul.f32 %v926_v26, %v2027_v39  ;;  %v929_v22 = vmul.f32 %v927_v27, %v2030_v40 }
 0x6fb   : > { %v939_v25 = vpop.permute.xlu1 %938  ;;  %v968_v38 = vrot.slane %v928_v21, 4  ;;  %v969_v41 = vrot.slane %v929_v22, 4 }
 0x6fc   : > { %v909_v13 = vpop.permute.xlu0 %908 }
 0x6fd   : > { %v983_v54 = vsel %vm567_vm1, %v889_v5, %v969_v41 }
 0x6ff   : > { %v941_v28 = vpop.permute.xlu1 %940 }
 0x700   : > { %v942_v32 = vsel %vm723_vm7, %v939_v25, %v941_v28  ;;  %v943_v33 = vsel %vm723_vm7, %v941_v28, %v939_v25 }
 0x701   : > { %v944_v31 = vmul.f32 %v942_v32, %v2038_v45  ;;  %v945_v37 = vmul.f32 %v943_v33, %v2041_v46  ;;  %v982_v45 = vsel %vm567_vm1, %v888_v3, %v968_v38 }
 0x703   : > { %v931_v47 = vpop.permute.xlu1 %930  ;;  %v974_v48 = vrot.slane %v944_v31, 4  ;;  %v975_v49 = vrot.slane %v945_v37, 4  ;;  %v1708_v31 = vmov 5  }
 0x704   : > { %v934_v39 = vsel %vm706_vm8, %v931_v47, %v933_v24  ;;  %v935_v40 = vsel %vm706_vm8, %v933_v24, %v931_v47  ;;  %1448 = vset.pattern.permute.xlu1 %v1708_v31 }
 0x705   : > { %v936_v50 = vmul.f32 %v934_v39, %v2054_v56  ;;  %v937_v51 = vmul.f32 %v935_v40, %v2057_v57 }
 0x707   : > { %v984_v46 = vsel %vm567_vm1, %v936_v50, %v974_v48  ;;  %v899_v53 = vpop.permute.xlu1 %898  ;;  %v985_v55 = vsel %vm567_vm1, %v937_v51, %v975_v49 }
 0x708   : > { %v989_v35 = vpack.c.bf16 %v985_v55, %v983_v54  ;;  %v988_v58 = vpack.c.bf16 %v984_v46, %v982_v45  ;;  %v902_v56 = vsel %vm638_vm9, %v899_v53, %v901_v34  ;;  %v903_v57 = vsel %vm638_vm9, %v901_v34, %v899_v53 }
 0x709   : > { %v904_v63 = vmul.f32 %v903_v57, %v2077_v1  ;;  %v905_v3 = vmul.f32 %v902_v56, %v2080_v0  ;;  %v1707_v34 = vmov 4  }
 0x70a   : > { %1014 = vmatprep.subr.bf16.mxu1 %v989_v35  ;;  %1447 = vset.pattern.permute.xlu0 %v1707_v34 }
 0x70b   : > { %1015 = vmatpush1.bf16.msra.mxu1 %v988_v58  ;;  %v915_v36 = vpop.permute.xlu1 %914  ;;  %v956_v17 = vrot.slane %v904_v63, 4  ;;  %v957_v1 = vrot.slane %v905_v3, 4 }
 0x70c   : > { %v918_v60 = vsel %vm672_vm10, %v915_v36, %v917_v52  ;;  %v919_v61 = vsel %vm672_vm10, %v917_v52, %v915_v36 }
 0x70d   : > { %v920_v11 = vmul.f32 %v919_v61, %v2083_v2  ;;  %v921_v12 = vmul.f32 %v918_v60, %v2086_v19 }
 0x70f   : > { %v891_v62 = vpop.permute.xlu1 %890  ;;  %v962_v18 = vrot.slane %v920_v11, 4  ;;  %v963_v23 = vrot.slane %v921_v12, 4 }
 0x710   : > { %v894_v5 = vsel %vm621_vm11, %v891_v62, %v893_v59  ;;  %v895_v10 = vsel %vm621_vm11, %v893_v59, %v891_v62 }
 0x711   : > { %v896_v14 = vmul.f32 %v895_v10, %v2099_v29  ;;  %v897_v15 = vmul.f32 %v894_v5, %v2102_v30 }
 0x713   : > { %v907_v16 = vpop.permute.xlu1 %906  ;;  %v978_v24 = vsel %vm567_vm1, %v896_v14, %v956_v17  ;;  %v979_v30 = vsel %vm567_vm1, %v897_v15, %v957_v1  ;;  %v1451_v17 = vld [vmem:[%s2303_s6] sm:$0xff]   ;;  %v463_v1 = vmul.f32 1.442695, %v2133_v6 }
 0x714   : > { %v910_v0 = vsel %vm655_vm12, %v907_v16, %v909_v13  ;;  %v911_v20 = vsel %vm655_vm12, %v909_v13, %v907_v16 }
 0x715   : > { %v912_v2 = vmul.f32 %v911_v20, %v2114_v42  ;;  %v913_v19 = vmul.f32 %v910_v0, %v2117_v43  ;;  %v465_v0 = vmul.f32 1.442695, %v2135_v7  ;;  %v467_v20 = vmul.f32 1.442695, %v2137_v8 }
 0x717   : > { %v980_v29 = vsel %vm567_vm1, %v912_v2, %v962_v18  ;;  %v981_v25 = vsel %vm567_vm1, %v913_v19, %v963_v23  ;;  %v469_v18 = vmul.f32 1.442695, %v2139_v9 }
 0x718   : > { %v987_v26 = vpack.c.bf16 %v981_v25, %v979_v30  ;;  %v986_v27 = vpack.c.bf16 %v980_v29, %v978_v24 }
 0x71a   : > { %1016 = vmatprep.subr.bf16.mxu1 %v987_v26 }
 0x71b   : > { %1017 = vmatpush1.bf16.msra.mxu1 %v986_v27 }
 0x71e   : > { %1326 = vmatmul.mubr.msk.bf16.vlgmr.msra.gmra.mxu1 %vm792_vm13, %v992_v4 }
 0x7de   : > { %v1036_v21 = vpop.f32.mrf.mxu1 }
 0x7df   : > { %v1043_v42 = vsel %vm567_vm1, %v1036_v21, 0.0 }
 0x7e0   : > { %v1038_v22 = vpop.f32.mrf.mxu1 }
 0x7e1   : > { %v1044_v43 = vsel %vm567_vm1, %v1038_v22, 0.0 }
 0x7e2   : > { %v1040_v28 = vpop.f32.mrf.mxu1  ;;  %v1045_v32 = vadd.f32 %v1044_v43, %v1043_v42 }
 0x7e4   : > { %1046 = vadd.xlane.f32.xlu1 %v1045_v32  ;;  %v1041_v33 = vpop.f32.mrf.mxu1 }
 0x7f5   : > { %1070 = vperm.xlu1 %1448, %v1951_v44  }
 0x86d   : > { %v1047_v37 = vpop.xlane.xlu1 %1046 }
 0x86e   : > { %v1048_v38 = vmul.f32 0.00390625, %v1047_v37 }
 0x870   : > { %v1049_v41 = vsub.f32 %v1036_v21, %v1048_v38  ;;  %v1050_v47 = vsub.f32 %v1038_v22, %v1048_v38 }
 0x871   : > { %v1071_v35 = vpop.permute.xlu1 %1070 }
 0x872   : > { %v1051_v39 = vmul.f32 %v1049_v41, %v1049_v41  ;;  %v1052_v40 = vmul.f32 %v1050_v47, %v1050_v47 }
 0x874   : > { %v1053_v48 = vsel %vm567_vm1, %v1051_v39, 0.0  ;;  %v1054_v49 = vsel %vm567_vm1, %v1052_v40, 0.0 }
 0x875   : > { %v1055_v50 = vadd.f32 %v1054_v49, %v1053_v48 }
 0x877   : > { %1056 = vadd.xlane.f32.xlu0 %v1055_v50 }
 0x88d   : > { %1064 = vperm.xlu0 %1447, %v1951_v44  }
 0x891   : > { %1449 = vset.pattern.permute.xlu0 %v1708_v31 }
 0x900   : > { %v1057_v51 = vpop.xlane.xlu0 %1056 }
 0x901   : > { %v1058_v52 = vmul.f32 0.00390625, %v1057_v51 }
 0x903   : > { %v1059_v45 = vadd.f32 1e-05, %v1058_v52 }
 0x905   : > { %1468 = vrsqrt.f32 %v1059_v45 }
 0x908   : > { %v1065_v53 = vpop.permute.xlu0 %1064 }
 0x912   : > { %v1469_v46 = vpop.eup %1468 }
 0x913   : > { %v1061_v54 = vmul.f32 %v1469_v46, %v1049_v41  ;;  %v1062_v55 = vmul.f32 %v1469_v46, %v1050_v47 }
 0x915   : > { %v1067_v58 = vmul.f32 %v1065_v53, %v1061_v54  ;;  %v1068_v36 = vmul.f32 %v1065_v53, %v1062_v55 }
 0x917   : > { %v1073_v59 = vadd.f32 %v1071_v35, %v1067_v58  ;;  %v1074_v56 = vadd.f32 %v1071_v35, %v1068_v36 }
 0x919   : > { %v1077_v57 = vmul.f32 1.442695, %v1073_v59  ;;  %v1079_v60 = vmul.f32 1.442695, %v1074_v56  ;;  %vm1075_vm0 = vcmp.gt.f32.partialorder %v1073_v59, 0.0  ;;  %vm1076_vm1 = vcmp.gt.f32.partialorder %v1074_v56, 0.0 }
 0x91b   : > { %1470 = vpow2.f32 %v1077_v57 }
 0x91c   : > { %1472 = vpow2.f32 %v1079_v60 }
 0x91d   : > { %1474 = vpow2.f32 %v463_v1 }
 0x91e   : > { %1476 = vpow2.f32 %v465_v0 }
 0x91f   : > { %1478 = vpow2.f32 %v467_v20 }
 0x920   : > { %1480 = vpow2.f32 %v469_v18 }
 0x928   : > { %v1471_v61 = vpop.eup %1470 }
 0x929   : > { %v1473_v44 = vpop.eup %1472  ;;  %v1327_v62 = vadd.f32 -1.0, %v1471_v61 }
 0x92a   : > { %v1328_v63 = vadd.f32 -1.0, %v1473_v44  ;;  %v1475_v23 = vpop.eup %1474 }
 0x92b   : > { %v1083_v3 = vmul.f32 1.6732632, %v1327_v62  ;;  %v1477_v2 = vpop.eup %1476  ;;  %v1312_v19 = vadd.f32 -1.0, %v1475_v23 }
 0x92c   : > { %v1084_v5 = vmul.f32 1.6732632, %v1328_v63  ;;  %v1479_v24 = vpop.eup %1478  ;;  %v1313_v29 = vadd.f32 -1.0, %v1477_v2 }
 0x92d   : > { %v1085_v10 = vsel %vm1075_vm0, %v1073_v59, %v1083_v3  ;;  %v1481_v30 = vpop.eup %1480  ;;  %v1314_v25 = vadd.f32 -1.0, %v1479_v24  ;;  %v475_v26 = vmul.f32 1.6732632, %v1312_v19 }
 0x92e   : > { %v1086_v11 = vsel %vm1076_vm1, %v1074_v56, %v1084_v5  ;;  %v1087_v12 = vmul.f32 1.050701, %v1085_v10  ;;  %v1315_v27 = vadd.f32 -1.0, %v1481_v30  ;;  %v476_v4 = vmul.f32 1.6732632, %v1313_v29 }
 0x92f   : > { %v1088_v13 = vmul.f32 1.050701, %v1086_v11  ;;  %v479_v21 = vsel %vm459_vm3, %v2133_v6, %v475_v26  ;;  %v477_v22 = vmul.f32 1.6732632, %v1314_v25 }
 0x930   : > { %v1091_v14 = vpack.c.bf16 %v1087_v12, %v1087_v12  ;;  %v480_v42 = vsel %vm460_vm4, %v2135_v7, %v476_v4  ;;  %v478_v43 = vmul.f32 1.6732632, %v1315_v27  ;;  %v483_v28 = vmul.f32 1.050701, %v479_v21 }
 0x931   : > { %v1092_v15 = vpack.c.bf16 %v1088_v13, %v1088_v13  ;;  %v484_v31 = vmul.f32 1.050701, %v480_v42 }
 0x932   : > { %v1103_v16 = vsel %vm796_vm5, %v1091_v14, 0  ;;  %v482_v38 = vsel %vm462_vm6, %v2139_v9, %v478_v43 }
 0x933   : > { %1330 = vmatprep.subr.msk.bf16.mxu0 %vm796_vm5, %v1092_v15  ;;  %vm461_vm5 = vcmp.gt.f32.partialorder %v2137_v8, 0.0  ;;  %v486_v39 = vmul.f32 1.050701, %v482_v38 }
 0x934   : > { %1123 = vmatpush1.bf16.msra.mxu0 %v1103_v16  ;;  %v481_v33 = vsel %vm461_vm5, %v2137_v8, %v477_v22 }
 0x935   : > { %v485_v7 = vmul.f32 1.050701, %v481_v33 }
 0x937   : > { %1331 = vmatmul.mubr.msk.bf16.vlgmr.msra.gmra.mxu0 %vm1098_vm2, %v1451_v17 }
 0x9f7   : > { %v1142_v32 = vpop.f32.mrf.mxu0 }
 0x9f8   : > { %v1143_v34 = vadd.f32 %v1142_v32, %v483_v28 }
 0x9f9   : > { %v1144_v37 = vpop.f32.mrf.mxu0 }
 0x9fa   : > { %1151 = vst [vmem:[%s388_s10] sm:$0xff] %v1143_v34  ;;  %v1145_v6 = vadd.f32 %v1144_v37, %v484_v31 }
 0x9fb   : > { %v1146_v41 = vpop.f32.mrf.mxu0 }
 0x9fc   : > { %1152 = vst [vmem:[%s388_s10 + $0x8] sm:$0xff] %v1145_v6  ;;  %v1147_v47 = vadd.f32 %v1146_v41, %v485_v7 }
 0x9fd   : > { %v1148_v8 = vpop.f32.mrf.mxu0 }
 0x9fe   : > { %1153 = vst [vmem:[%s388_s10 + $0x10] sm:$0xff] %v1147_v47  ;;  %v1149_v9 = vadd.f32 %v1148_v8, %v486_v39 }
 0xa00   : > { %1154 = vst [vmem:[%s388_s10 + $0x18] sm:$0xff] %v1149_v9 }
 0xa01   : > { %1627 = shalt.err (!%p1624_p10)
}
 0xa02   : > { %s1628_s13 = scalar_lea.hbm %s2253_s18, 512  ;;  %s1632_s10 = scalar_lea.hbm %s2305_s8, 1024 }
 0xa03   : > { %p1629_p8 = scmp.ne.s32.totalorder %s2253_s18, %s1628_s13  ;;  %p1633_p4 = scmp.lt.s32.totalorder %s2253_s18, %s2305_s8 }
 0xa04   : > { %p1634_p7 = scmp.lt.s32.totalorder %s1632_s10, %s1628_s13 }
 0xa05   : > { %p1630_p3 = pnand %p1629_p8, %p2331_p13 }
 0xa06   : > { %p1635_p12 = por %p1634_p7, %p1633_p4 }
 0xa07   : > { %p1631_p11 = pneg %p1630_p3 }
 0xa09   : > { %p1636_p9 = pnand %p1635_p12, %p1631_p11 }
 0xa0b   : > { %1639 = shalt.err (!%p1636_p9)
}
 0xa0c   : > { %s1710_s17 = smov 256  }
 0xa0d   : > { %1357 = dma.vmem_to_hbm [thread:$0]  (%p2331_p13), %s2248_s24, 512, %s2253_s18, %s1156_s21, %s1710_s17, %s1710_s17, %s1699_s23  }
 0xa0e PF: > { %s1184_s19 = sand.u32 1, %s1674_s27   ;;  %p2332_p0 = scmp.ne.s32.totalorder %s2315_s12, 0 }
 0xa0f   : > { %p2333_p5 = scmp.ge.s32.totalorder %s1686_s30, 2  ;;  %s1185_s9 = scalar_lea.sflag [#allocation4], %s1184_s19 }
 0xa11   : > { %p1377_p1 = pnand %p2333_p5, %p2332_p0 }
 0xa13   : > { %p1378_p2 = pneg %p1377_p1 }
 0xa15   : > { %1669 = dma.done.wait (%p1378_p2), %s1185_s9, 512  }
 0xa16   : > { %1671 = vsyncadd (%p1378_p2), %s1185_s9, 4294966784  ;;  %p23_p6 = scmp.ge.s32.totalorder %s1847_s20, 4   ;;  %s2334_s27 = smov %s1678_s28 }
 0xa17   : > { %s2335_s28 = smov %s1682_s29  ;;  %s2336_s29 = smov %s1863_s15 }
 0xa18   : > { %s2337_s30 = smov %s1847_s20  ;;  %25 = sbr.rel (!%p23_p6) target bundleno = 10 (0xa), region = 116 }
 0xa1d   :  { %1190 = vsyncpa [#allocation3], 1 }
 0xa1e   :  { %1192 = vsyncpa [#allocation3 + $0x1], 1 }
 0xa1f   :  { %1193 = vsyncpa [#allocation6], 1 }
 0xa20   :  { %1194 = vsyncpa [#allocation9], 1 }
 0xa21   :  { %1195 = vsyncpa [#allocation4], 1 }
 0xa22   :  { %1197 = vsyncpa [#allocation4 + $0x1], 1 }

</bundles_post_ra>
